<compile_context>
chip_gen: v6e
topology: v6e:2x2x1
jax: 0.10.0
libtpu: 0.0.40
codegen_flags: <defaults>
</compile_context>

<pallas_src>
import functools

import jax
import jax.numpy as jnp
from jax import lax
from jax.experimental import pallas as pl
from jax.experimental.pallas import tpu as pltpu

EPS = 1e-5


# ------------------------------ kernel ------------------------------------- #

def _bn_train_cm(z, gamma, beta):
    """Train-mode BatchNorm on a (C, M) slab; stats over axis 1 (all N*H*W).

    Centered two-pass variance (robust to cancellation), f32 math, fused as
    (z - mean) * scale + beta. Matches PyTorch BatchNorm2d training forward
    (running stats / momentum do not affect the output).
    """
    inv_m = 1.0 / z.shape[1]
    mean = jnp.sum(z, axis=1, keepdims=True) * inv_m
    zc = z - mean
    var = jnp.sum(zc * zc, axis=1, keepdims=True) * inv_m
    scale = gamma * lax.rsqrt(var + EPS)
    return zc * scale + beta


def bottleneck_kernel(x_ref, mask_ref, w1_ref, g1_ref, b1_ref,
                      w2_ref, g2_ref, b2_ref,
                      w3_ref, g3_ref, b3_ref,
                      o_ref, *, H, W):
    # x_ref  : (N, Cin, H*W)  f32    NCHW input, spatial flattened (lane dense)
    # mask   : (9, N*H*W)     f32    precomputed 3x3 tap validity (0/1)
    # w1     : (width, Cin)      bf16   1x1 conv
    # w2     : (width, 9*width)  bf16   grouped 3x3 conv, tap-major block-diag
    # w3     : (Cout, width)     bf16   1x1 conv
    # g*/b*  : (C, 1)            f32    BN affine
    # o_ref  : (N, Cout, H*W) f32    NCHW output, spatial flattened (lane dense)
    N = x_ref.shape[0]
    HW = H * W
    M = N * HW

    # ---- conv1 (1x1) + bn1 + relu: per-image bf16 dots, no (Cin, M) x copy --
    z1 = jnp.concatenate(
        [jnp.dot(w1_ref[...], x_ref[n].astype(jnp.bfloat16),
                 preferred_element_type=jnp.float32)
         for n in range(N)], axis=1)                                # (width, M)
    a1 = jnp.maximum(_bn_train_cm(z1, g1_ref[...], b1_ref[...]), 0.0)

    # ---- conv2: grouped 3x3, stride 1, pad 1, as ONE K=9*width matmul -------
    # Each tap is an XLU lane rotation of a1; padded positions are zeroed by
    # the precomputed masks. The im2col operand is assembled in bf16.
    masks = mask_ref[...]                                           # (9, M) f32
    cols = []
    for tap in range(9):                         # static 3x3 tap loop
        dy, dx = divmod(tap, 3)
        d = (dy - 1) * W + (dx - 1)              # flat lane offset of this tap
        shifted = a1 if d == 0 else pltpu.roll(a1, (-d) % M, axis=1)
        cols.append((shifted * masks[tap:tap + 1, :]).astype(jnp.bfloat16))
    col = jnp.concatenate(cols, axis=0)          # (9*width, M) bf16 im2col

    z2 = jnp.dot(w2_ref[...], col, preferred_element_type=jnp.float32)
    a2 = jnp.maximum(_bn_train_cm(z2, g2_ref[...], b2_ref[...]), 0.0)

    # ---- conv3 (1x1) + bn3 ---------------------------------------------------
    z3 = jnp.dot(w3_ref[...], a2.astype(jnp.bfloat16),
                 preferred_element_type=jnp.float32)                # (Cout, M)
    y = _bn_train_cm(z3, g3_ref[...], b3_ref[...])

    # ---- residual (downsample=None -> identity) + relu, per-image stores ----
    # x is re-read straight from its ref (no duplicate slab); every store is
    # lane dense (last dim H*W is a multiple of 128).
    for n in range(N):
        o_ref[n] = jnp.maximum(y[:, n * HW:(n + 1) * HW] + x_ref[n], 0.0)


# ------------------------------ wrapper ------------------------------------ #

def make_tap_masks(N, H, W):
    """(9, N*H*W) f32 validity masks for the 3x3 / pad=1 taps (tap-major, dy outer).

    Precomputed once so the kernel never runs integer div/mod on the VPU.
    """
    HW = H * W
    m = jnp.arange(N * HW, dtype=jnp.int32)
    hh = (m % HW) // W
    ww = m % W
    rows = []
    for dy in (-1, 0, 1):
        for dx in (-1, 0, 1):
            nh, nw = hh + dy, ww + dx
            rows.append((nh >= 0) & (nh < H) & (nw >= 0) & (nw < W))
    return jnp.stack(rows, axis=0).astype(jnp.float32)


def bottleneck_forward(x_nchw, params):
    """Full Bottleneck forward. Input/output are NCHW, like PyTorch."""
    N, Cin, H, W = x_nchw.shape
    width = params["w1t"].shape[0]
    Cout = params["w3t"].shape[0]
    assert Cin == Cout, "downsample=None requires inplanes == planes*expansion"
    HW, M = H * W, N * H * W

    x3d = x_nchw.reshape(N, Cin, HW)             # free reshape, no transpose
    masks = params["masks"]
    assert masks.shape == (9, M)

    # Advisory cost estimate (MXU flops + rough elementwise, 3 rsqrt vectors).
    flops = int(2 * M * (width * Cin + width * 9 * width + Cout * width)
                + 12 * M * (2 * width + Cout))
    param_bytes = sum(int(v.size) * int(v.dtype.itemsize) for v in params.values())
    bytes_accessed = int(x3d.size) * 4 + int(N * Cout * HW) * 4 + param_bytes
    cost = pl.CostEstimate(flops=flops,
                           transcendentals=int(2 * width + Cout),
                           bytes_accessed=bytes_accessed)

    vmem = pl.BlockSpec(memory_space=pltpu.MemorySpace.VMEM)
    out3d = pl.pallas_call(
        functools.partial(bottleneck_kernel, H=H, W=W),
        out_shape=jax.ShapeDtypeStruct((N, Cout, HW), jnp.float32),
        in_specs=[vmem] * 11,
        out_specs=vmem,
        cost_estimate=cost,
        compiler_params=pltpu.CompilerParams(
            # Whole block is VMEM resident; 32 MiB stays well under v7x's
            # 64 MiB physical VMEM (and v5e/v6e's 128 MiB).
            vmem_limit_bytes=32 * 1024 * 1024),
    )(x3d, masks,
      params["w1t"], params["g1"], params["b1"],
      params["w2mat"], params["g2"], params["b2"],
      params["w3t"], params["g3"], params["b3"])
    return out3d.reshape(N, Cout, H, W)          # free reshape, no transpose


# --------------------------- pure-JAX reference ----------------------------- #

def reference_forward(x, p_torch, groups):
    def bn(z, g, b):
        mean = z.mean(axis=(0, 2, 3), keepdims=True)
        var = ((z - mean) ** 2).mean(axis=(0, 2, 3), keepdims=True)
        return (z - mean) / jnp.sqrt(var + EPS) * g.reshape(1, -1, 1, 1) \
            + b.reshape(1, -1, 1, 1)

    dn = ("NCHW", "OIHW", "NCHW")
    hp = lax.Precision.HIGHEST
    out = lax.conv_general_dilated(x, p_torch["w1"], (1, 1), "VALID",
                                   dimension_numbers=dn, precision=hp)
    out = jnp.maximum(bn(out, p_torch["g1"], p_torch["b1"]), 0.0)
    out = lax.conv_general_dilated(out, p_torch["w2"], (1, 1),
                                   ((1, 1), (1, 1)), dimension_numbers=dn,
                                   feature_group_count=groups, precision=hp)
    out = jnp.maximum(bn(out, p_torch["g2"], p_torch["b2"]), 0.0)
    out = lax.conv_general_dilated(out, p_torch["w3"], (1, 1), "VALID",
                                   dimension_numbers=dn, precision=hp)
    out = bn(out, p_torch["g3"], p_torch["b3"]) + x
    return jnp.maximum(out, 0.0)


# -------------------------------- main -------------------------------------- #

if __name__ == "__main__":
    # Small Bottleneck: planes=8 -> width=planes*2=16, out=planes*4=32,
    # inplanes=32 (== planes*4, so downsample=None is valid), groups=4.
    N, H, W = 2, 16, 16
    planes, inplanes, groups = 8, 32, 4
    width, Cout = planes * 2, planes * 4
    cg = width // groups

    key = jax.random.PRNGKey(0)
    ks = jax.random.split(key, 10)

    # PyTorch-shaped (OIHW) weights, deterministic.
    w1_oihw = 0.1 * jax.random.normal(ks[0], (width, inplanes, 1, 1), jnp.float32)
    w2_oihw = 0.1 * jax.random.normal(ks[1], (width, cg, 3, 3), jnp.float32)
    w3_oihw = 0.1 * jax.random.normal(ks[2], (Cout, width, 1, 1), jnp.float32)
    g1 = 1.0 + 0.1 * jax.random.normal(ks[3], (width,), jnp.float32)
    b1 = 0.1 * jax.random.normal(ks[4], (width,), jnp.float32)
    g2 = 1.0 + 0.1 * jax.random.normal(ks[5], (width,), jnp.float32)
    b2 = 0.1 * jax.random.normal(ks[6], (width,), jnp.float32)
    g3 = 1.0 + 0.1 * jax.random.normal(ks[7], (Cout,), jnp.float32)
    b3 = 0.1 * jax.random.normal(ks[8], (Cout,), jnp.float32)

    # Kernel-layout weights (channels-first "C x M" math), cast to bf16 ONCE:
    #   1x1 convs as (Cout, Cin) matrices; grouped 3x3 as a single
    #   (width, 9*width) matrix of block-diagonal per-tap blocks (tap-major).
    # TODO(synk): at production group counts (e.g. groups=32, width>=128) use
    # per-group / batched dot_general instead of the dense block-diag weight.
    w1t = w1_oihw[:, :, 0, 0]                    # (width, inplanes)
    w3t = w3_oihw[:, :, 0, 0]                    # (Cout, width)
    tap_blocks = []
    for dy in range(3):
        for dx in range(3):
            dense = jnp.zeros((width, width), jnp.float32)
            for g in range(groups):
                blk = w2_oihw[g * cg:(g + 1) * cg, :, dy, dx]   # (out_g, in_g)
                dense = dense.at[g * cg:(g + 1) * cg,
                                 g * cg:(g + 1) * cg].set(blk)
            tap_blocks.append(dense)
    w2mat = jnp.concatenate(tap_blocks, axis=1)                 # (width, 9*width)

    params = dict(
        w1t=w1t.astype(jnp.bfloat16),
        w2mat=w2mat.astype(jnp.bfloat16),
        w3t=w3t.astype(jnp.bfloat16),
        g1=g1.reshape(-1, 1), b1=b1.reshape(-1, 1),
        g2=g2.reshape(-1, 1), b2=b2.reshape(-1, 1),
        g3=g3.reshape(-1, 1), b3=b3.reshape(-1, 1),
        masks=make_tap_masks(N, H, W),
    )
    params_torch = dict(w1=w1_oihw, w2=w2_oihw, w3=w3_oihw,
                        g1=g1, b1=b1, g2=g2, b2=b2, g3=g3, b3=b3)

    x = jax.random.normal(ks[9], (N, inplanes, H, W), jnp.float32)   # NCHW

    out = jax.block_until_ready(bottleneck_forward(x, params))
    ref = jax.block_until_ready(reference_forward(x, params_torch, groups))

    assert out.shape == (N, Cout, H, W)
    # Tolerance is set for bf16 MXU operands (f32 accumulation) vs an f32
    # HIGHEST-precision reference: expected max |err| ~1e-2 on O(1) outputs.
    assert jnp.allclose(out, ref, atol=5e-2, rtol=5e-2), \
        f"max abs err {jnp.max(jnp.abs(out - ref))}"
    print("KERNEL_OK")
</pallas_src>

<mosaic_0001>
module attributes {stable_mosaic.version = 11 : i64} {
  func.func @bottleneck_kernel(%arg0: memref<2x32x256xf32, #tpu.memory_space<vmem>>, %arg1: memref<9x512xf32, #tpu.memory_space<vmem>>, %arg2: memref<16x32xbf16, #tpu.memory_space<vmem>>, %arg3: memref<16x1xf32, #tpu.memory_space<vmem>>, %arg4: memref<16x1xf32, #tpu.memory_space<vmem>>, %arg5: memref<16x144xbf16, #tpu.memory_space<vmem>>, %arg6: memref<16x1xf32, #tpu.memory_space<vmem>>, %arg7: memref<16x1xf32, #tpu.memory_space<vmem>>, %arg8: memref<32x16xbf16, #tpu.memory_space<vmem>>, %arg9: memref<32x1xf32, #tpu.memory_space<vmem>>, %arg10: memref<32x1xf32, #tpu.memory_space<vmem>>, %arg11: memref<2x32x256xf32, #tpu.memory_space<vmem>>) attributes {dimension_semantics = [], scalar_prefetch = 0 : i64, scratch_operands = 0 : i64, tpu.core_type = #tpu.core_type<tc>} {
    %c0 = arith.constant 0 : index
    %c0_0 = arith.constant 0 : index
    %0 = vector.load %arg2[%c0, %c0_0] : memref<16x32xbf16, #tpu.memory_space<vmem>>, vector<16x32xbf16>
    %c0_1 = arith.constant 0 : index
    %c0_2 = arith.constant 0 : index
    %c0_3 = arith.constant 0 : index
    %1 = vector.load %arg0[%c0_1, %c0_2, %c0_3] : memref<2x32x256xf32, #tpu.memory_space<vmem>>, vector<1x32x256xf32>
    %2 = vector.shape_cast %1 : vector<1x32x256xf32> to vector<32x256xf32>
    %3 = arith.truncf %2 : vector<32x256xf32> to vector<32x256xbf16>
    %cst = arith.constant dense<0.000000e+00> : vector<16x256xf32>
    %4 = tpu.matmul %0, %3, %cst {dimension_numbers = #tpu.dot_dimension_numbers<[1], [0], [0], [1], [0, 0, 1, 1], [], []>} : vector<16x32xbf16>, vector<32x256xbf16>, vector<16x256xf32> -> vector<16x256xf32>
    %c0_4 = arith.constant 0 : index
    %c0_5 = arith.constant 0 : index
    %5 = vector.load %arg2[%c0_4, %c0_5] : memref<16x32xbf16, #tpu.memory_space<vmem>>, vector<16x32xbf16>
    %c1 = arith.constant 1 : index
    %c0_6 = arith.constant 0 : index
    %c0_7 = arith.constant 0 : index
    %6 = vector.load %arg0[%c1, %c0_6, %c0_7] : memref<2x32x256xf32, #tpu.memory_space<vmem>>, vector<1x32x256xf32>
    %7 = vector.shape_cast %6 : vector<1x32x256xf32> to vector<32x256xf32>
    %8 = arith.truncf %7 : vector<32x256xf32> to vector<32x256xbf16>
    %cst_8 = arith.constant dense<0.000000e+00> : vector<16x256xf32>
    %9 = tpu.matmul %5, %8, %cst_8 {dimension_numbers = #tpu.dot_dimension_numbers<[1], [0], [0], [1], [0, 0, 1, 1], [], []>} : vector<16x32xbf16>, vector<32x256xbf16>, vector<16x256xf32> -> vector<16x256xf32>
    %10 = tpu.concatenate %4, %9 in 1 : vector<16x256xf32>, vector<16x256xf32> -> vector<16x512xf32>
    %c0_9 = arith.constant 0 : index
    %c0_10 = arith.constant 0 : index
    %11 = vector.load %arg3[%c0_9, %c0_10] : memref<16x1xf32, #tpu.memory_space<vmem>>, vector<16x1xf32>
    %c0_11 = arith.constant 0 : index
    %c0_12 = arith.constant 0 : index
    %12 = vector.load %arg4[%c0_11, %c0_12] : memref<16x1xf32, #tpu.memory_space<vmem>>, vector<16x1xf32>
    %cst_13 = arith.constant dense<0.000000e+00> : vector<16xf32>
    %13 = vector.multi_reduction <add>, %10, %cst_13 [1] : vector<16x512xf32> to vector<16xf32>
    %14 = vector.shape_cast %13 : vector<16xf32> to vector<16x1xf32>
    %cst_14 = arith.constant 0.001953125 : f32
    %15 = vector.broadcast %cst_14 : f32 to vector<16x1xf32>
    %16 = arith.mulf %14, %15 : vector<16x1xf32>
    %17 = vector.broadcast %16 : vector<16x1xf32> to vector<16x512xf32>
    %18 = arith.subf %10, %17 : vector<16x512xf32>
    %19 = arith.mulf %18, %18 : vector<16x512xf32>
    %cst_15 = arith.constant dense<0.000000e+00> : vector<16xf32>
    %20 = vector.multi_reduction <add>, %19, %cst_15 [1] : vector<16x512xf32> to vector<16xf32>
    %21 = vector.shape_cast %20 : vector<16xf32> to vector<16x1xf32>
    %cst_16 = arith.constant 0.001953125 : f32
    %22 = vector.broadcast %cst_16 : f32 to vector<16x1xf32>
    %23 = arith.mulf %21, %22 : vector<16x1xf32>
    %cst_17 = arith.constant 9.99999974E-6 : f32
    %24 = vector.broadcast %cst_17 : f32 to vector<16x1xf32>
    %25 = arith.addf %23, %24 : vector<16x1xf32>
    %26 = math.rsqrt %25 : vector<16x1xf32>
    %27 = arith.mulf %11, %26 : vector<16x1xf32>
    %28 = vector.broadcast %27 : vector<16x1xf32> to vector<16x512xf32>
    %29 = arith.mulf %18, %28 : vector<16x512xf32>
    %30 = vector.broadcast %12 : vector<16x1xf32> to vector<16x512xf32>
    %31 = arith.addf %29, %30 : vector<16x512xf32>
    %cst_18 = arith.constant 0.000000e+00 : f32
    %32 = vector.broadcast %cst_18 : f32 to vector<16x512xf32>
    %33 = arith.maximumf %31, %32 : vector<16x512xf32>
    %c0_19 = arith.constant 0 : index
    %c0_20 = arith.constant 0 : index
    %34 = vector.load %arg1[%c0_19, %c0_20] : memref<9x512xf32, #tpu.memory_space<vmem>>, vector<9x512xf32>
    %c17_i32 = arith.constant 17 : i32
    %35 = tpu.dynamic_rotate %33 by %c17_i32 dim 1 : vector<16x512xf32>, i32 -> vector<16x512xf32>
    %36 = vector.extract_strided_slice %34 {offsets = [0, 0], sizes = [1, 512], strides = [1, 1]} : vector<9x512xf32> to vector<1x512xf32>
    %37 = vector.broadcast %36 : vector<1x512xf32> to vector<16x512xf32>
    %38 = arith.mulf %35, %37 : vector<16x512xf32>
    %39 = arith.truncf %38 : vector<16x512xf32> to vector<16x512xbf16>
    %c16_i32 = arith.constant 16 : i32
    %40 = tpu.dynamic_rotate %33 by %c16_i32 dim 1 : vector<16x512xf32>, i32 -> vector<16x512xf32>
    %41 = vector.extract_strided_slice %34 {offsets = [1, 0], sizes = [1, 512], strides = [1, 1]} : vector<9x512xf32> to vector<1x512xf32>
    %42 = vector.broadcast %41 : vector<1x512xf32> to vector<16x512xf32>
    %43 = arith.mulf %40, %42 : vector<16x512xf32>
    %44 = arith.truncf %43 : vector<16x512xf32> to vector<16x512xbf16>
    %c15_i32 = arith.constant 15 : i32
    %45 = tpu.dynamic_rotate %33 by %c15_i32 dim 1 : vector<16x512xf32>, i32 -> vector<16x512xf32>
    %46 = vector.extract_strided_slice %34 {offsets = [2, 0], sizes = [1, 512], strides = [1, 1]} : vector<9x512xf32> to vector<1x512xf32>
    %47 = vector.broadcast %46 : vector<1x512xf32> to vector<16x512xf32>
    %48 = arith.mulf %45, %47 : vector<16x512xf32>
    %49 = arith.truncf %48 : vector<16x512xf32> to vector<16x512xbf16>
    %c1_i32 = arith.constant 1 : i32
    %50 = tpu.dynamic_rotate %33 by %c1_i32 dim 1 : vector<16x512xf32>, i32 -> vector<16x512xf32>
    %51 = vector.extract_strided_slice %34 {offsets = [3, 0], sizes = [1, 512], strides = [1, 1]} : vector<9x512xf32> to vector<1x512xf32>
    %52 = vector.broadcast %51 : vector<1x512xf32> to vector<16x512xf32>
    %53 = arith.mulf %50, %52 : vector<16x512xf32>
    %54 = arith.truncf %53 : vector<16x512xf32> to vector<16x512xbf16>
    %55 = vector.extract_strided_slice %34 {offsets = [4, 0], sizes = [1, 512], strides = [1, 1]} : vector<9x512xf32> to vector<1x512xf32>
    %56 = vector.broadcast %55 : vector<1x512xf32> to vector<16x512xf32>
    %57 = arith.mulf %33, %56 : vector<16x512xf32>
    %58 = arith.truncf %57 : vector<16x512xf32> to vector<16x512xbf16>
    %c511_i32 = arith.constant 511 : i32
    %59 = tpu.dynamic_rotate %33 by %c511_i32 dim 1 : vector<16x512xf32>, i32 -> vector<16x512xf32>
    %60 = vector.extract_strided_slice %34 {offsets = [5, 0], sizes = [1, 512], strides = [1, 1]} : vector<9x512xf32> to vector<1x512xf32>
    %61 = vector.broadcast %60 : vector<1x512xf32> to vector<16x512xf32>
    %62 = arith.mulf %59, %61 : vector<16x512xf32>
    %63 = arith.truncf %62 : vector<16x512xf32> to vector<16x512xbf16>
    %c497_i32 = arith.constant 497 : i32
    %64 = tpu.dynamic_rotate %33 by %c497_i32 dim 1 : vector<16x512xf32>, i32 -> vector<16x512xf32>
    %65 = vector.extract_strided_slice %34 {offsets = [6, 0], sizes = [1, 512], strides = [1, 1]} : vector<9x512xf32> to vector<1x512xf32>
    %66 = vector.broadcast %65 : vector<1x512xf32> to vector<16x512xf32>
    %67 = arith.mulf %64, %66 : vector<16x512xf32>
    %68 = arith.truncf %67 : vector<16x512xf32> to vector<16x512xbf16>
    %c496_i32 = arith.constant 496 : i32
    %69 = tpu.dynamic_rotate %33 by %c496_i32 dim 1 : vector<16x512xf32>, i32 -> vector<16x512xf32>
    %70 = vector.extract_strided_slice %34 {offsets = [7, 0], sizes = [1, 512], strides = [1, 1]} : vector<9x512xf32> to vector<1x512xf32>
    %71 = vector.broadcast %70 : vector<1x512xf32> to vector<16x512xf32>
    %72 = arith.mulf %69, %71 : vector<16x512xf32>
    %73 = arith.truncf %72 : vector<16x512xf32> to vector<16x512xbf16>
    %c495_i32 = arith.constant 495 : i32
    %74 = tpu.dynamic_rotate %33 by %c495_i32 dim 1 : vector<16x512xf32>, i32 -> vector<16x512xf32>
    %75 = vector.extract_strided_slice %34 {offsets = [8, 0], sizes = [1, 512], strides = [1, 1]} : vector<9x512xf32> to vector<1x512xf32>
    %76 = vector.broadcast %75 : vector<1x512xf32> to vector<16x512xf32>
    %77 = arith.mulf %74, %76 : vector<16x512xf32>
    %78 = arith.truncf %77 : vector<16x512xf32> to vector<16x512xbf16>
    %79 = tpu.concatenate %39, %44, %49, %54, %58, %63, %68, %73, %78 in 0 : vector<16x512xbf16>, vector<16x512xbf16>, vector<16x512xbf16>, vector<16x512xbf16>, vector<16x512xbf16>, vector<16x512xbf16>, vector<16x512xbf16>, vector<16x512xbf16>, vector<16x512xbf16> -> vector<144x512xbf16>
    %c0_21 = arith.constant 0 : index
    %c0_22 = arith.constant 0 : index
    %80 = vector.load %arg5[%c0_21, %c0_22] : memref<16x144xbf16, #tpu.memory_space<vmem>>, vector<16x144xbf16>
    %cst_23 = arith.constant dense<0.000000e+00> : vector<16x512xf32>
    %81 = tpu.matmul %80, %79, %cst_23 {dimension_numbers = #tpu.dot_dimension_numbers<[1], [0], [0], [1], [0, 0, 1, 1], [], []>} : vector<16x144xbf16>, vector<144x512xbf16>, vector<16x512xf32> -> vector<16x512xf32>
    %c0_24 = arith.constant 0 : index
    %c0_25 = arith.constant 0 : index
    %82 = vector.load %arg6[%c0_24, %c0_25] : memref<16x1xf32, #tpu.memory_space<vmem>>, vector<16x1xf32>
    %c0_26 = arith.constant 0 : index
    %c0_27 = arith.constant 0 : index
    %83 = vector.load %arg7[%c0_26, %c0_27] : memref<16x1xf32, #tpu.memory_space<vmem>>, vector<16x1xf32>
    %cst_28 = arith.constant dense<0.000000e+00> : vector<16xf32>
    %84 = vector.multi_reduction <add>, %81, %cst_28 [1] : vector<16x512xf32> to vector<16xf32>
    %85 = vector.shape_cast %84 : vector<16xf32> to vector<16x1xf32>
    %cst_29 = arith.constant 0.001953125 : f32
    %86 = vector.broadcast %cst_29 : f32 to vector<16x1xf32>
    %87 = arith.mulf %85, %86 : vector<16x1xf32>
    %88 = vector.broadcast %87 : vector<16x1xf32> to vector<16x512xf32>
    %89 = arith.subf %81, %88 : vector<16x512xf32>
    %90 = arith.mulf %89, %89 : vector<16x512xf32>
    %cst_30 = arith.constant dense<0.000000e+00> : vector<16xf32>
    %91 = vector.multi_reduction <add>, %90, %cst_30 [1] : vector<16x512xf32> to vector<16xf32>
    %92 = vector.shape_cast %91 : vector<16xf32> to vector<16x1xf32>
    %cst_31 = arith.constant 0.001953125 : f32
    %93 = vector.broadcast %cst_31 : f32 to vector<16x1xf32>
    %94 = arith.mulf %92, %93 : vector<16x1xf32>
    %cst_32 = arith.constant 9.99999974E-6 : f32
    %95 = vector.broadcast %cst_32 : f32 to vector<16x1xf32>
    %96 = arith.addf %94, %95 : vector<16x1xf32>
    %97 = math.rsqrt %96 : vector<16x1xf32>
    %98 = arith.mulf %82, %97 : vector<16x1xf32>
    %99 = vector.broadcast %98 : vector<16x1xf32> to vector<16x512xf32>
    %100 = arith.mulf %89, %99 : vector<16x512xf32>
    %101 = vector.broadcast %83 : vector<16x1xf32> to vector<16x512xf32>
    %102 = arith.addf %100, %101 : vector<16x512xf32>
    %cst_33 = arith.constant 0.000000e+00 : f32
    %103 = vector.broadcast %cst_33 : f32 to vector<16x512xf32>
    %104 = arith.maximumf %102, %103 : vector<16x512xf32>
    %c0_34 = arith.constant 0 : index
    %c0_35 = arith.constant 0 : index
    %105 = vector.load %arg8[%c0_34, %c0_35] : memref<32x16xbf16, #tpu.memory_space<vmem>>, vector<32x16xbf16>
    %106 = arith.truncf %104 : vector<16x512xf32> to vector<16x512xbf16>
    %cst_36 = arith.constant dense<0.000000e+00> : vector<32x512xf32>
    %107 = tpu.matmul %105, %106, %cst_36 {dimension_numbers = #tpu.dot_dimension_numbers<[1], [0], [0], [1], [0, 0, 1, 1], [], []>} : vector<32x16xbf16>, vector<16x512xbf16>, vector<32x512xf32> -> vector<32x512xf32>
    %c0_37 = arith.constant 0 : index
    %c0_38 = arith.constant 0 : index
    %108 = vector.load %arg9[%c0_37, %c0_38] : memref<32x1xf32, #tpu.memory_space<vmem>>, vector<32x1xf32>
    %c0_39 = arith.constant 0 : index
    %c0_40 = arith.constant 0 : index
    %109 = vector.load %arg10[%c0_39, %c0_40] : memref<32x1xf32, #tpu.memory_space<vmem>>, vector<32x1xf32>
    %cst_41 = arith.constant dense<0.000000e+00> : vector<32xf32>
    %110 = vector.multi_reduction <add>, %107, %cst_41 [1] : vector<32x512xf32> to vector<32xf32>
    %111 = vector.shape_cast %110 : vector<32xf32> to vector<32x1xf32>
    %cst_42 = arith.constant 0.001953125 : f32
    %112 = vector.broadcast %cst_42 : f32 to vector<32x1xf32>
    %113 = arith.mulf %111, %112 : vector<32x1xf32>
    %114 = vector.broadcast %113 : vector<32x1xf32> to vector<32x512xf32>
    %115 = arith.subf %107, %114 : vector<32x512xf32>
    %116 = arith.mulf %115, %115 : vector<32x512xf32>
    %cst_43 = arith.constant dense<0.000000e+00> : vector<32xf32>
    %117 = vector.multi_reduction <add>, %116, %cst_43 [1] : vector<32x512xf32> to vector<32xf32>
    %118 = vector.shape_cast %117 : vector<32xf32> to vector<32x1xf32>
    %cst_44 = arith.constant 0.001953125 : f32
    %119 = vector.broadcast %cst_44 : f32 to vector<32x1xf32>
    %120 = arith.mulf %118, %119 : vector<32x1xf32>
    %cst_45 = arith.constant 9.99999974E-6 : f32
    %121 = vector.broadcast %cst_45 : f32 to vector<32x1xf32>
    %122 = arith.addf %120, %121 : vector<32x1xf32>
    %123 = math.rsqrt %122 : vector<32x1xf32>
    %124 = arith.mulf %108, %123 : vector<32x1xf32>
    %125 = vector.broadcast %124 : vector<32x1xf32> to vector<32x512xf32>
    %126 = arith.mulf %115, %125 : vector<32x512xf32>
    %127 = vector.broadcast %109 : vector<32x1xf32> to vector<32x512xf32>
    %128 = arith.addf %126, %127 : vector<32x512xf32>
    %129 = vector.extract_strided_slice %128 {offsets = [0, 0], sizes = [32, 256], strides = [1, 1]} : vector<32x512xf32> to vector<32x256xf32>
    %c0_46 = arith.constant 0 : index
    %c0_47 = arith.constant 0 : index
    %c0_48 = arith.constant 0 : index
    %130 = vector.load %arg0[%c0_46, %c0_47, %c0_48] : memref<2x32x256xf32, #tpu.memory_space<vmem>>, vector<1x32x256xf32>
    %131 = vector.shape_cast %130 : vector<1x32x256xf32> to vector<32x256xf32>
    %132 = arith.addf %129, %131 : vector<32x256xf32>
    %cst_49 = arith.constant 0.000000e+00 : f32
    %133 = vector.broadcast %cst_49 : f32 to vector<32x256xf32>
    %134 = arith.maximumf %132, %133 : vector<32x256xf32>
    %c0_50 = arith.constant 0 : index
    %c0_51 = arith.constant 0 : index
    %c0_52 = arith.constant 0 : index
    %135 = vector.load %arg11[%c0_50, %c0_51, %c0_52] : memref<2x32x256xf32, #tpu.memory_space<vmem>>, vector<1x32x256xf32>
    %136 = vector.shape_cast %135 : vector<1x32x256xf32> to vector<32x256xf32>
    %137 = vector.shape_cast %134 : vector<32x256xf32> to vector<1x32x256xf32>
    tpu.vector_store %arg11[%c0_50, %c0_51, %c0_52], %137 {strides = array<i32>} : memref<2x32x256xf32, #tpu.memory_space<vmem>>, vector<1x32x256xf32>,
    %138 = vector.extract_strided_slice %128 {offsets = [0, 256], sizes = [32, 256], strides = [1, 1]} : vector<32x512xf32> to vector<32x256xf32>
    %c1_53 = arith.constant 1 : index
    %c0_54 = arith.constant 0 : index
    %c0_55 = arith.constant 0 : index
    %139 = vector.load %arg0[%c1_53, %c0_54, %c0_55] : memref<2x32x256xf32, #tpu.memory_space<vmem>>, vector<1x32x256xf32>
    %140 = vector.shape_cast %139 : vector<1x32x256xf32> to vector<32x256xf32>
    %141 = arith.addf %138, %140 : vector<32x256xf32>
    %cst_56 = arith.constant 0.000000e+00 : f32
    %142 = vector.broadcast %cst_56 : f32 to vector<32x256xf32>
    %143 = arith.maximumf %141, %142 : vector<32x256xf32>
    %c1_57 = arith.constant 1 : index
    %c0_58 = arith.constant 0 : index
    %c0_59 = arith.constant 0 : index
    %144 = vector.load %arg11[%c1_57, %c0_58, %c0_59] : memref<2x32x256xf32, #tpu.memory_space<vmem>>, vector<1x32x256xf32>
    %145 = vector.shape_cast %144 : vector<1x32x256xf32> to vector<32x256xf32>
    %146 = vector.shape_cast %143 : vector<32x256xf32> to vector<1x32x256xf32>
    tpu.vector_store %arg11[%c1_57, %c0_58, %c0_59], %146 {strides = array<i32>} : memref<2x32x256xf32, #tpu.memory_space<vmem>>, vector<1x32x256xf32>,
    return
  }
}

</mosaic_0001>

<bundles_post_ra>
// kernel: tpu_custom_call.1
= control target key start
LH: loop header
LB: loop body
LE: loop exit
PB: predicated region body
PF: predicated region fallthrough
CT: control target
= control target key end

     0   :  { %16 = vsyncpa [#allocation3], 0  ;;  %s2385_s0 = inlined_call_operand.vmem [shape: f32[2,32,256], index: 0, kind: input, shape index: {}]   ;;  %s2386_s1 = inlined_call_operand.hbm [shape: f32[9,512], index: 1, kind: input, shape index: {}]   ;;  %s2387_s2 = inlined_call_operand.vmem [shape: bf16[16,32], index: 2, kind: input, shape index: {}]   ;;  %s2388_s3 = inlined_call_operand.vmem [shape: f32[16,1], index: 3, kind: input, shape index: {}]   ;;  %s2389_s4 = inlined_call_operand.vmem [shape: f32[16,1], index: 4, kind: input, shape index: {}]   ;;  %s2390_s5 = inlined_call_operand.vmem [shape: bf16[16,144], index: 5, kind: input, shape index: {}]   ;;  %s2391_s6 = inlined_call_operand.vmem [shape: f32[16,1], index: 6, kind: input, shape index: {}]   ;;  %s2392_s7 = inlined_call_operand.vmem [shape: f32[16,1], index: 7, kind: input, shape index: {}]   ;;  %s2393_s8 = inlined_call_operand.vmem [shape: bf16[32,16], index: 8, kind: input, shape index: {}]   ;;  %s2394_s9 = inlined_call_operand.vmem [shape: f32[32,1], index: 9, kind: input, shape index: {}]   ;;  %s2395_s10 = inlined_call_operand.vmem [shape: f32[32,1], index: 10, kind: input, shape index: {}]   ;;  %s2396_s11 = inlined_call_operand.hbm [shape: f32[2,32,256], index: 11, kind: output, shape index: {}]  }
   0x1   :  { %17 = vsyncpa [#allocation4], 0  ;;  %s1426_s17 = smov [#allocation2]  }
   0x2   :  { %s25_s18 = sshll.u32 %s1426_s17, 4  ;;  %s26_s18 = int_to_ptr.vmem [resolvable:$true] %s25_s18 }
   0x3   :  { %s1390_s19 = scalar_lea.vmem %s26_s18, 1024  ;;  %p1395_p1 = scmp.lt.s32.totalorder %s26_s18, %s26_s18 }
   0x4   :  { %p1391_p0 = scmp.ne.s32.totalorder %s26_s18, %s1390_s19  ;;  %p1396_p2 = scmp.lt.s32.totalorder %s1390_s19, %s1390_s19 }
   0x6   :  { %p1397_p3 = por %p1396_p2, %p1395_p1 }
   0x8   :  { %p1398_p4 = pnand %p1397_p3, %p1391_p0 }
   0xa   :  { %1401 = shalt.err (!%p1398_p4)
}
   0xb   :  { %s1427_s20 = smov 512   ;;  %s1428_s21 = smov 32  }
   0xc   :  { %31 = dma.hbm_to_vmem [thread:$0]  %s2386_s1, 1024, %s26_s18, [#allocation3], %s1427_s20, %s1427_s20, %s1428_s21  }
   0xd   :  { %1422 = dma.done.wait [#allocation3], 1024  }
   0xe   :  { %1423 = vsyncadd [#allocation3], 4294966272  ;;  %v2397_v0 = vmov 0   ;;  %v61_v1 = vld [vmem:[%s2385_s0 + $0x28] sm:$0xff]  ;;  %v63_v2 = vld [vmem:[%s2385_s0 + $0x38] sm:$0xff]  ;;  %vm73_vm0 = vcmask 261120  }
   0xf   :  { %109 = vmatprep.mubr.bf16.mxu0 %v2397_v0  ;;  %165 = vmatprep.mubr.bf16.mxu1 %v2397_v0  ;;  %v1310_v3 = vld [vmem:[%s2385_s0 + $0x68] sm:$0xff]  ;;  %v67_v4 = vpack.c.bf16 %v63_v2, %v61_v1  ;;  %v1312_v5 = vld [vmem:[%s2385_s0 + $0x78] sm:$0xff]  ;;  %v60_v6 = vld [vmem:[%s2385_s0 + $0x20] sm:$0xff]  ;;  %s1432_s25 = smov 127   ;;  %s1433_s26 = smov 1   ;;  %vm743_vm2 = vcmask 130048  }
  0x10   :  { %1350 = vset.pattern.permute.xlu1 %v2397_v0  ;;  %1351 = vset.pattern.permute.xlu0 %v2397_v0  ;;  %v62_v7 = vld [vmem:[%s2385_s0 + $0x30] sm:$0xff]  ;;  %v132_v8 = vpack.c.bf16 %v1312_v5, %v1310_v3  ;;  %v1309_v10 = vld [vmem:[%s2385_s0 + $0x60] sm:$0xff]  ;;  %v57_v12 = vld [vmem:[%s2385_s0 + $0x8] sm:$0xff]  ;;  %s1434_s27 = smov 15   ;;  %s1435_s1 = smov 16  }
  0x11   :  { %v66_v9 = vpack.c.bf16 %v62_v7, %v60_v6  ;;  %v1311_v11 = vld [vmem:[%s2385_s0 + $0x70] sm:$0xff]  ;;  %89 = vmatprep.subr.bf16.mxu0 %v67_v4  ;;  %v59_v14 = vld [vmem:[%s2385_s0 + $0x18] sm:$0xff]  ;;  %v1306_v15 = vld [vmem:[%s2385_s0 + $0x48] sm:$0xff]  ;;  %s1436_s28 = smov 17   ;;  %s1437_s29 = smov 111  }
  0x12   :  { %v131_v13 = vpack.c.bf16 %v1311_v11, %v1309_v10  ;;  %v1308_v16 = vld [vmem:[%s2385_s0 + $0x58] sm:$0xff]  ;;  %145 = vmatprep.subr.bf16.mxu1 %v132_v8  ;;  %v65_v17 = vpack.c.bf16 %v59_v14, %v57_v12  ;;  %v56_v19 = vld [vmem:[%s2385_s0] sm:$0xff]  ;;  %v58_v20 = vld [vmem:[%s2385_s0 + $0x10] sm:$0xff] }
  0x13   :  { %90 = vmatpush1.bf16.msra.mxu0 %v66_v9  ;;  %v130_v18 = vpack.c.bf16 %v1308_v16, %v1306_v15  ;;  %v1305_v21 = vld [vmem:[%s2385_s0 + $0x40] sm:$0xff]  ;;  %v64_v22 = vpack.c.bf16 %v58_v20, %v56_v19  ;;  %v1307_v23 = vld [vmem:[%s2385_s0 + $0x50] sm:$0xff]  ;;  %v179_v4 = vld [vmem:[%s2389_s4 + $0x8] sm:$0xff] }
  0x14   :  { %146 = vmatpush1.bf16.msra.mxu1 %v131_v13  ;;  %91 = vmatprep.subr.bf16.mxu0 %v65_v17  ;;  %v129_v24 = vpack.c.bf16 %v1307_v23, %v1305_v21  ;;  %v1352_v25 = vld [vmem:[%s2387_s2] sm:$0xff]   ;;  %v177_v14 = vld [vmem:[%s2388_s3 + $0x8] sm:$0xff] }
  0x15   :  { %147 = vmatprep.subr.bf16.mxu1 %v130_v18  ;;  %v178_v3 = vld [vmem:[%s2389_s4] sm:$0xff]  ;;  %s1430_s4 = smov 112  }
  0x16   :  { %v176_v11 = vld [vmem:[%s2388_s3] sm:$0xff]  ;;  %s1431_s3 = smov 113  }
  0x17   :  { %92 = vmatpush1.bf16.msra.mxu0 %v64_v22 }
  0x18   :  { %148 = vmatpush1.bf16.msra.mxu1 %v129_v24 }
  0x1a   :  { %1304 = vmatmul.mubr.msk.bf16.vlgmr.msra.gmra.mxu0 %vm73_vm0, %v1352_v25 }
  0x1b   :  { %1313 = vmatmul.mubr.msk.bf16.vlgmr.msra.gmra.mxu1 %vm73_vm0, %v1352_v25 }
  0xda   :  { %v111_v26 = vpop.f32.mrf.mxu0 }
  0xdb   :  { %v167_v27 = vpop.f32.mrf.mxu1 }
  0xdc   :  { %v113_v28 = vpop.f32.mrf.mxu0 }
  0xdd   :  { %v180_v29 = vadd.f32 %v113_v28, %v111_v26  ;;  %v169_v30 = vpop.f32.mrf.mxu1 }
  0xde   :  { %v115_v31 = vpop.f32.mrf.mxu0 }
  0xdf   :  { %v181_v32 = vadd.f32 %v180_v29, %v167_v27  ;;  %v171_v33 = vpop.f32.mrf.mxu1 }
  0xe0   :  { %v117_v34 = vpop.f32.mrf.mxu0 }
  0xe1   :  { %v185_v35 = vadd.f32 %v117_v34, %v115_v31  ;;  %v182_v36 = vadd.f32 %v181_v32, %v169_v30  ;;  %v173_v38 = vpop.f32.mrf.mxu1 }
  0xe3   :  { %183 = vadd.xlane.f32.xlu0 %v182_v36  ;;  %v186_v37 = vadd.f32 %v185_v35, %v171_v33 }
  0xe5   :  { %v187_v39 = vadd.f32 %v186_v37, %v173_v38 }
  0xe7   :  { %188 = vadd.xlane.f32.xlu0 %v187_v39 }
 0x16c   :  { %v184_v40 = vpop.xlane.xlu0 %183 }
 0x16d   :  { %v190_v41 = vmul.f32 0.001953125, %v184_v40 }
 0x16f   :  { %v192_v42 = vsub.f32 %v111_v26, %v190_v41  ;;  %v193_v43 = vsub.f32 %v113_v28, %v190_v41  ;;  %v194_v44 = vsub.f32 %v167_v27, %v190_v41  ;;  %v1558_v46 = vsub.f32 %v169_v30, %v190_v41 }
 0x170   :  { %v189_v45 = vpop.xlane.xlu0 %188 }
 0x171   :  { %v191_v47 = vmul.f32 0.001953125, %v189_v45  ;;  %v200_v48 = vmul.f32 %v192_v42, %v192_v42  ;;  %v201_v49 = vmul.f32 %v193_v43, %v193_v43  ;;  %v202_v50 = vmul.f32 %v194_v44, %v194_v44 }
 0x172   :  { %v203_v55 = vmul.f32 %v1558_v46, %v1558_v46  ;;  %v294_v45 = vlaneseq }
 0x173   :  { %v196_v51 = vsub.f32 %v115_v31, %v191_v47  ;;  %v197_v52 = vsub.f32 %v117_v34, %v191_v47  ;;  %v208_v53 = vadd.f32 %v201_v49, %v200_v48  ;;  %v198_v54 = vsub.f32 %v171_v33, %v191_v47 }
 0x174   :  { %v199_v57 = vsub.f32 %v173_v38, %v191_v47  ;;  %v1666_v47 = vand.u32 127, %v294_v45 }
 0x175   :  { %v209_v56 = vadd.f32 %v208_v53, %v202_v50  ;;  %v204_v58 = vmul.f32 %v196_v51, %v196_v51  ;;  %v205_v59 = vmul.f32 %v197_v52, %v197_v52  ;;  %v206_v61 = vmul.f32 %v198_v54, %v198_v54  ;;  %v1671_v50 = vld [vmem:[#allocation2 + $0x8] sm:$0xff] }
 0x176   :  { %v207_v63 = vmul.f32 %v199_v57, %v199_v57  ;;  %vm642_vm1 = vcmp.lt.s32.totalorder %v1666_v47, 112  ;;  %vm589_vm3 = vcmp.lt.s32.totalorder %v1666_v47, 113  ;;  %vm536_vm4 = vcmp.lt.s32.totalorder %v1666_v47, 127 }
 0x177   :  { %v210_v60 = vadd.f32 %v209_v56, %v203_v55  ;;  %v213_v62 = vadd.f32 %v205_v59, %v204_v58  ;;  %v1684_v55 = vld [vmem:[#allocation2] sm:$0xff]  ;;  %vm455_vm5 = vcmp.lt.s32.totalorder %v1666_v47, 1  ;;  %vm402_vm6 = vcmp.lt.s32.totalorder %v1666_v47, 15 }
 0x178   :  { %v1353_v59 = vld [vmem:[%s2390_s5 + $0x4] ss:$8 sps:$4 sm:$0xff]   ;;  %vm349_vm7 = vcmp.lt.s32.totalorder %v1666_v47, 16  ;;  %vm296_vm8 = vcmp.lt.s32.totalorder %v1666_v47, 17  ;;  %vm695_vm9 = vcmp.lt.s32.totalorder %v1666_v47, 111 }
 0x179   :  { %211 = vadd.xlane.f32.xlu1 %v210_v60  ;;  %v214_v1 = vadd.f32 %v213_v62, %v206_v61  ;;  %1320 = vmatprep.mubr.msk.bf16.mxu0 %vm743_vm2, %v1353_v59 }
 0x17a   :  { %1321 = vmatprep.mubr.msk.bf16.mxu1 %vm743_vm2, %v1353_v59 }
 0x17b   :  { %v215_v2 = vadd.f32 %v214_v1, %v207_v63 }
 0x17d   :  { %216 = vadd.xlane.f32.xlu1 %v215_v2 }
 0x18e   :  { %246 = vperm.xlu1 %1350, %v178_v3  }
 0x192   :  { %251 = vperm.xlu1 %1350, %v179_v4  }
 0x202   :  { %v212_v5 = vpop.xlane.xlu1 %211 }
 0x203   :  { %v218_v6 = vmul.f32 0.001953125, %v212_v5 }
 0x205   :  { %v220_v7 = vadd.f32 1e-05, %v218_v6 }
 0x206   :  { %v217_v8 = vpop.xlane.xlu1 %216 }
 0x207   :  { %1358 = vrsqrt.f32 %v220_v7  ;;  %v219_v9 = vmul.f32 0.001953125, %v217_v8  ;;  %v1717_v7 = vld [vmem:[#allocation2 + $0x18] sm:$0xff] }
 0x209   :  { %v221_v10 = vadd.f32 1e-05, %v219_v9  ;;  %v1721_v9 = vld [vmem:[#allocation2 + $0x10] sm:$0xff] }
 0x20a   :  { %v247_v17 = vpop.permute.xlu1 %246 }
 0x20b   :  { %1360 = vrsqrt.f32 %v221_v10 }
 0x20e   :  { %v252_v18 = vpop.permute.xlu1 %251 }
 0x214   :  { %v1359_v12 = vpop.eup %1358 }
 0x215   :  { %v224_v13 = vmul.f32 %v1359_v12, %v176_v11 }
 0x217   :  { %228 = vperm.xlu0 %1351, %v224_v13  }
 0x218   :  { %v1361_v15 = vpop.eup %1360 }
 0x219   :  { %v225_v16 = vmul.f32 %v1361_v15, %v177_v14 }
 0x21b   :  { %233 = vperm.xlu1 %1350, %v225_v16  }
 0x292   :  { %v229_v19 = vpop.permute.xlu0 %228 }
 0x293   :  { %v237_v20 = vmul.f32 %v229_v19, %v193_v43  ;;  %v238_v21 = vmul.f32 %v229_v19, %v194_v44  ;;  %v236_v24 = vmul.f32 %v229_v19, %v192_v42  ;;  %v239_v39 = vmul.f32 %v229_v19, %v1558_v46 }
 0x294   :  { %v1663_v46 = vshrl.u32 %v294_v45, 7 }
 0x295   :  { %v255_v22 = vadd.f32 %v247_v17, %v237_v20  ;;  %v256_v25 = vadd.f32 %v247_v17, %v238_v21  ;;  %v254_v30 = vadd.f32 %v247_v17, %v236_v24  ;;  %v257_v42 = vadd.f32 %v247_v17, %v239_v39 }
 0x296   :  { %v234_v23 = vpop.permute.xlu1 %233  ;;  %v653_v48 = vsub.s32 7, %v1663_v46  ;;  %v600_v63 = vsub.s32 6, %v1663_v46  ;;  %v494_v16 = vsub.s32 4, %v1663_v46 }
 0x297   :  { %v1574_v26 = vmax.f32 %v255_v22, 0.0  ;;  %v240_v27 = vmul.f32 %v234_v23, %v196_v51  ;;  %v241_v28 = vmul.f32 %v234_v23, %v197_v52  ;;  %v1578_v31 = vmax.f32 %v256_v25, 0.0 }
 0x298   :  { %v242_v32 = vmul.f32 %v234_v23, %v198_v54  ;;  %v1586_v35 = vmax.f32 %v254_v30, 0.0  ;;  %v243_v36 = vmul.f32 %v234_v23, %v199_v57  ;;  %v1603_v44 = vmax.f32 %v257_v42, 0.0 }
 0x299   :  { %630 = vrot.lane.b32.xlu1 %v1574_v26, %s1430_s4  ;;  %v258_v29 = vadd.f32 %v252_v18, %v240_v27  ;;  %v259_v33 = vadd.f32 %v252_v18, %v241_v28  ;;  %v1676_v51 = vrot.slane %v1671_v50, %v653_v48  ;;  %v1692_v57 = vrot.slane %v1684_v55, %v653_v48 }
 0x29a   :  { %v260_v37 = vadd.f32 %v252_v18, %v242_v32  ;;  %v261_v40 = vadd.f32 %v252_v18, %v243_v36  ;;  %v605_v3 = vrot.slane %v1671_v50, %v600_v63  ;;  %v666_v12 = vrot.slane %v1717_v7, %v653_v48 }
 0x29b   :  { %v1580_v34 = vmax.f32 %v258_v29, 0.0  ;;  %v1588_v38 = vmax.f32 %v259_v33, 0.0  ;;  %v1731_v13 = vrot.slane %v1721_v9, %v653_v48  ;;  %v601_v19 = vrot.slane %v1684_v55, %v600_v63 }
 0x29c   :  { %v1594_v41 = vmax.f32 %v260_v37, 0.0  ;;  %v1598_v43 = vmax.f32 %v261_v40, 0.0  ;;  %v1756_v33 = vsub.s32 5, %v1663_v46  ;;  %v613_v59 = vrot.slane %v1717_v7, %v600_v63 }
 0x29d   :  { %634 = vrot.lane.b32.xlu1 %v1578_v31, %s1430_s4  ;;  %628 = vrot.lane.b32.xlu0 %v1580_v34, %s1430_s4 }
 0x29e   :  { %v552_v40 = vrot.slane %v1671_v50, %v1756_v33 }
 0x2a1   :  { %626 = vrot.lane.b32.xlu1 %v1586_v35, %s1430_s4  ;;  %579 = vrot.lane.b32.xlu0 %v1588_v38, %s1431_s3 }
 0x2a5   :  { %577 = vrot.lane.b32.xlu1 %v1574_v26, %s1431_s3  ;;  %583 = vrot.lane.b32.xlu0 %v1594_v41, %s1431_s3 }
 0x2a9   :  { %581 = vrot.lane.b32.xlu1 %v1578_v31, %s1431_s3  ;;  %640 = vrot.lane.b32.xlu0 %v1598_v43, %s1430_s4 }
 0x2ad   :  { %638 = vrot.lane.b32.xlu1 %v1603_v44, %s1430_s4  ;;  %575 = vrot.lane.b32.xlu0 %v1580_v34, %s1431_s3 }
 0x2b1   :  { %573 = vrot.lane.b32.xlu1 %v1586_v35, %s1431_s3  ;;  %526 = vrot.lane.b32.xlu0 %v1588_v38, %s1432_s25 }
 0x2b5   :  { %524 = vrot.lane.b32.xlu1 %v1574_v26, %s1432_s25  ;;  %530 = vrot.lane.b32.xlu0 %v1594_v41, %s1432_s25 }
 0x2b9   :  { %528 = vrot.lane.b32.xlu1 %v1578_v31, %s1432_s25  ;;  %587 = vrot.lane.b32.xlu0 %v1598_v43, %s1431_s3 }
 0x2bd   :  { %585 = vrot.lane.b32.xlu1 %v1603_v44, %s1431_s3  ;;  %522 = vrot.lane.b32.xlu0 %v1580_v34, %s1432_s25 }
 0x2c1   :  { %520 = vrot.lane.b32.xlu1 %v1586_v35, %s1432_s25  ;;  %534 = vrot.lane.b32.xlu0 %v1598_v43, %s1432_s25 }
 0x2c5   :  { %532 = vrot.lane.b32.xlu1 %v1603_v44, %s1432_s25  ;;  %441 = vrot.lane.b32.xlu0 %v1580_v34, %s1433_s26 }
 0x2c9   :  { %439 = vrot.lane.b32.xlu1 %v1586_v35, %s1433_s26  ;;  %445 = vrot.lane.b32.xlu0 %v1588_v38, %s1433_s26 }
 0x2cd   :  { %443 = vrot.lane.b32.xlu1 %v1574_v26, %s1433_s26  ;;  %453 = vrot.lane.b32.xlu0 %v1598_v43, %s1433_s26 }
 0x2d1   :  { %451 = vrot.lane.b32.xlu1 %v1603_v44, %s1433_s26  ;;  %388 = vrot.lane.b32.xlu0 %v1580_v34, %s1434_s27 }
 0x2d5   :  { %386 = vrot.lane.b32.xlu1 %v1586_v35, %s1434_s27  ;;  %392 = vrot.lane.b32.xlu0 %v1588_v38, %s1434_s27 }
 0x2d9   :  { %390 = vrot.lane.b32.xlu1 %v1574_v26, %s1434_s27  ;;  %449 = vrot.lane.b32.xlu0 %v1594_v41, %s1433_s26 }
 0x2dd   :  { %447 = vrot.lane.b32.xlu1 %v1578_v31, %s1433_s26  ;;  %400 = vrot.lane.b32.xlu0 %v1598_v43, %s1434_s27 }
 0x2e1   :  { %398 = vrot.lane.b32.xlu1 %v1603_v44, %s1434_s27  ;;  %335 = vrot.lane.b32.xlu0 %v1580_v34, %s1435_s1 }
 0x2e5   :  { %333 = vrot.lane.b32.xlu1 %v1586_v35, %s1435_s1  ;;  %339 = vrot.lane.b32.xlu0 %v1588_v38, %s1435_s1 }
 0x2e9   :  { %337 = vrot.lane.b32.xlu1 %v1574_v26, %s1435_s1  ;;  %396 = vrot.lane.b32.xlu0 %v1594_v41, %s1434_s27 }
 0x2ed   :  { %394 = vrot.lane.b32.xlu1 %v1578_v31, %s1434_s27  ;;  %347 = vrot.lane.b32.xlu0 %v1598_v43, %s1435_s1 }
 0x2f1   :  { %345 = vrot.lane.b32.xlu1 %v1603_v44, %s1435_s1  ;;  %280 = vrot.lane.b32.xlu0 %v1580_v34, %s1436_s28 }
 0x2f5   :  { %632 = vrot.lane.b32.xlu1 %v1588_v38, %s1430_s4  ;;  %284 = vrot.lane.b32.xlu0 %v1588_v38, %s1436_s28 }
 0x2f9   :  { %636 = vrot.lane.b32.xlu1 %v1594_v41, %s1430_s4  ;;  %343 = vrot.lane.b32.xlu0 %v1594_v41, %s1435_s1 }
 0x2fd   :  { %278 = vrot.lane.b32.xlu1 %v1586_v35, %s1436_s28  ;;  %292 = vrot.lane.b32.xlu0 %v1598_v43, %s1436_s28 }
 0x301   :  { %282 = vrot.lane.b32.xlu1 %v1574_v26, %s1436_s28  ;;  %288 = vrot.lane.b32.xlu0 %v1594_v41, %s1436_s28 }
 0x305   :  { %341 = vrot.lane.b32.xlu1 %v1578_v31, %s1435_s1  ;;  %685 = vrot.lane.b32.xlu0 %v1588_v38, %s1437_s29 }
 0x309   :  { %290 = vrot.lane.b32.xlu1 %v1603_v44, %s1436_s28  ;;  %689 = vrot.lane.b32.xlu0 %v1594_v41, %s1437_s29 }
 0x30b   :  { %v631_v49 = vpop.permute.xlu1 %630 }
 0x30d   :  { %286 = vrot.lane.b32.xlu1 %v1578_v31, %s1436_s28  ;;  %681 = vrot.lane.b32.xlu0 %v1580_v34, %s1437_s29 }
 0x30f   :  { %v635_v52 = vpop.permute.xlu1 %634  ;;  %v1682_v54 = vpop.permute.xlu0 %628 }
 0x310   :  { %v645_v53 = vsel %vm642_vm1, %v631_v49, %v635_v52 }
 0x311   :  { %v1687_v56 = vmul.f32 %v1676_v51, %v645_v53  ;;  %683 = vrot.lane.b32.xlu1 %v1574_v26, %s1437_s29  ;;  %693 = vrot.lane.b32.xlu0 %v1598_v43, %s1437_s29 }
 0x313   :  { %v627_v58 = vpop.permute.xlu1 %626  ;;  %v580_v61 = vpop.permute.xlu0 %579 }
 0x314   :  { %v647_v60 = vsel %vm642_vm1, %v627_v58, %v631_v49 }
 0x315   :  { %v1702_v62 = vmul.f32 %v1692_v57, %v647_v60  ;;  %687 = vrot.lane.b32.xlu1 %v1578_v31, %s1437_s29 }
 0x317   :  { %v578_v1 = vpop.permute.xlu1 %577  ;;  %v584_v2 = vpop.permute.xlu0 %583 }
 0x318   :  { %v593_v4 = vsel %vm589_vm3, %v580_v61, %v584_v2 }
 0x319   :  { %679 = vrot.lane.b32.xlu1 %v1586_v35, %s1437_s29  ;;  %v1723_v10 = vmul.f32 %v605_v3, %v593_v4 }
 0x31b   :  { %v582_v5 = vpop.permute.xlu1 %581  ;;  %v1719_v8 = vpop.permute.xlu0 %640 }
 0x31c   :  { %v592_v6 = vsel %vm589_vm3, %v578_v1, %v582_v5  ;;  %v650_v14 = vsel %vm642_vm1, %v1719_v8, %v1682_v54 }
 0x31d   :  { %v1725_v11 = vmul.f32 %v605_v3, %v592_v6  ;;  %691 = vrot.lane.b32.xlu1 %v1603_v44, %s1437_s29  ;;  %v674_v21 = vmul.f32 %v666_v12, %v650_v14 }
 0x31f   :  { %v639_v15 = vpop.permute.xlu1 %638  ;;  %v576_v20 = vpop.permute.xlu0 %575 }
 0x320   :  { %v643_v17 = vsel %vm642_vm1, %v635_v52, %v639_v15  ;;  %v649_v18 = vsel %vm642_vm1, %v639_v15, %v627_v58  ;;  %v595_v24 = vsel %vm589_vm3, %v576_v20, %v580_v61  ;;  %v609_v58 = vrot.slane %v1721_v9, %v600_v63 }
 0x321   :  { %v1745_v22 = vmul.f32 %v1731_v13, %v643_v17  ;;  %v670_v23 = vmul.f32 %v666_v12, %v649_v18  ;;  %v1751_v30 = vmul.f32 %v601_v19, %v595_v24  ;;  %v548_v12 = vrot.slane %v1684_v55, %v1756_v33 }
 0x323   :  { %v574_v25 = vpop.permute.xlu1 %573  ;;  %v678_v27 = vpack.c.bf16 %v674_v21, %v670_v23  ;;  %v527_v29 = vpop.permute.xlu0 %526 }
 0x324   :  { %v594_v28 = vsel %vm589_vm3, %v574_v25, %v578_v1 }
 0x325   :  { %v1753_v32 = vmul.f32 %v601_v19, %v594_v28  ;;  %790 = vmatprep.subr.bf16.mxu1 %v678_v27  ;;  %v556_v27 = vrot.slane %v1721_v9, %v1756_v33 }
 0x327   :  { %v525_v37 = vpop.permute.xlu1 %524  ;;  %v531_v39 = vpop.permute.xlu0 %530 }
 0x328   :  { %v540_v42 = vsel %vm536_vm4, %v527_v29, %v531_v39 }
 0x329   :  { %v1767_v52 = vmul.f32 %v552_v40, %v540_v42 }
 0x32b   :  { %v529_v45 = vpop.permute.xlu1 %528  ;;  %v588_v49 = vpop.permute.xlu0 %587 }
 0x32c   :  { %v539_v48 = vsel %vm536_vm4, %v525_v37, %v529_v45  ;;  %v591_v60 = vsel %vm589_vm3, %v584_v2, %v588_v49  ;;  %v597_v61 = vsel %vm589_vm3, %v588_v49, %v576_v20 }
 0x32d   :  { %v1769_v53 = vmul.f32 %v552_v40, %v539_v48  ;;  %v1787_v14 = vmul.f32 %v609_v58, %v591_v60  ;;  %v1789_v2 = vmul.f32 %v613_v59, %v597_v61 }
 0x32f   :  { %v586_v1 = vpop.permute.xlu1 %585  ;;  %v1785_v63 = vpop.permute.xlu0 %522 }
 0x330   :  { %v590_v4 = vsel %vm589_vm3, %v582_v5, %v586_v1  ;;  %v596_v6 = vsel %vm589_vm3, %v586_v1, %v574_v25  ;;  %v542_v5 = vsel %vm536_vm4, %v1785_v63, %v527_v29 }
 0x331   :  { %v1791_v15 = vmul.f32 %v609_v58, %v590_v4  ;;  %v1793_v17 = vmul.f32 %v613_v59, %v596_v6  ;;  %v1809_v24 = vmul.f32 %v548_v12, %v542_v5 }
 0x333   :  { %v1800_v19 = vpop.permute.xlu1 %520  ;;  %v1807_v23 = vpop.permute.xlu0 %534  ;;  %2414 = vst [vmem:[#allocation8_spill] sm:$0xff] %v1809_v24 }
 0x334   :  { %v541_v21 = vsel %vm536_vm4, %v1800_v19, %v525_v37  ;;  %v538_v28 = vsel %vm536_vm4, %v531_v39, %v1807_v23 }
 0x335   :  { %v1811_v25 = vmul.f32 %v548_v12, %v541_v21  ;;  %v1824_v48 = vmul.f32 %v556_v27, %v538_v28 }
 0x337   :  { %2415 = vst [vmem:[#allocation9_spill] sm:$0xff] %v1811_v25  ;;  %v533_v40 = vpop.permute.xlu1 %532  ;;  %v1822_v42 = vpop.permute.xlu0 %441  ;;  %2416 = vst [vmem:[#allocation10_spill] sm:$0xff] %v1824_v48  ;;  %v466_v48 = vsub.s32 3, %v1663_v46 }
 0x338   :  { %v537_v37 = vsel %vm536_vm4, %v529_v45, %v533_v40 }
 0x339   :  { %v1826_v49 = vmul.f32 %v556_v27, %v537_v37 }
 0x33b   :  { %2417 = vst [vmem:[#allocation11_spill] sm:$0xff] %v1826_v49  ;;  %v1830_v59 = vpop.permute.xlu1 %439  ;;  %v1832_v60 = vpop.permute.xlu0 %445 }
 0x33f   :  { %v1834_v39 = vpop.permute.xlu1 %443  ;;  %v1836_v61 = vpop.permute.xlu0 %453 }
 0x343   :  { %v1838_v1 = vpop.permute.xlu1 %451  ;;  %v1840_v45 = vpop.permute.xlu0 %388 }
 0x347   :  { %v1842_v4 = vpop.permute.xlu1 %386  ;;  %v1844_v6 = vpop.permute.xlu0 %392 }
 0x34b   :  { %v1846_v12 = vpop.permute.xlu1 %390  ;;  %v1848_v5 = vpop.permute.xlu0 %449 }
 0x34f   :  { %v1850_v21 = vpop.permute.xlu1 %447  ;;  %v1852_v27 = vpop.permute.xlu0 %400 }
 0x350   :  { %2418 = vst [vmem:[#allocation12_spill] sm:$0xff] %v1852_v27 }
 0x353   :  { %v1854_v28 = vpop.permute.xlu1 %398  ;;  %v1856_v37 = vpop.permute.xlu0 %335 }
 0x354   :  { %2419 = vst [vmem:[#allocation13_spill] sm:$0xff] %v1856_v37  ;;  %v507_v37 = vrot.slane %v1717_v7, %v494_v16 }
 0x357   :  { %v1858_v0 = vpop.permute.xlu1 %333  ;;  %v1860_v29 = vpop.permute.xlu0 %339 }
 0x358   :  { %2420 = vst [vmem:[#allocation14_spill] sm:$0xff] %v1858_v0  ;;  %2421 = vst [vmem:[#allocation15_spill] sm:$0xff] %v1860_v29  ;;  %v499_v0 = vrot.slane %v1671_v50, %v494_v16  ;;  %v503_v29 = vrot.slane %v1721_v9, %v494_v16 }
 0x35a   :  { %v1891_v27 = vmul.f32 %v503_v29, %v1594_v41 }
 0x35b   :  { %v1862_v58 = vpop.permute.xlu1 %337  ;;  %v1864_v3 = vpop.permute.xlu0 %396 }
 0x35c   :  { %2422 = vst [vmem:[#allocation16_spill] sm:$0xff] %v1862_v58  ;;  %2423 = vst [vmem:[#allocation17_spill] sm:$0xff] %v1864_v3  ;;  %v495_v58 = vrot.slane %v1684_v55, %v494_v16  ;;  %v1880_v3 = vmul.f32 %v507_v37, %v1598_v43  ;;  %v1898_v43 = vmul.f32 %v507_v37, %v1603_v44 }
 0x35d   :  { %v467_v37 = vrot.slane %v1684_v55, %v466_v48 }
 0x35e   :  { %v1894_v49 = vmul.f32 %v495_v58, %v1580_v34  ;;  %v1909_v41 = vmul.f32 %v495_v58, %v1586_v35  ;;  %v519_v44 = vpack.c.bf16 %v1880_v3, %v1898_v43 }
 0x35f   :  { %v1866_v36 = vpop.permute.xlu1 %394  ;;  %v1868_v18 = vpop.permute.xlu0 %347 }
 0x360   :  { %2424 = vst [vmem:[#allocation18_spill] sm:$0xff] %v1866_v36  ;;  %2425 = vst [vmem:[#allocation19_spill] sm:$0xff] %v1868_v18  ;;  %v1883_v18 = vmul.f32 %v499_v0, %v1588_v38  ;;  %v1901_v38 = vmul.f32 %v499_v0, %v1574_v26 }
 0x363   :  { %v1871_v20 = vpop.permute.xlu1 %345  ;;  %v1873_v25 = vpop.permute.xlu0 %280 }
 0x364   :  { %2426 = vst [vmem:[#allocation20_spill] sm:$0xff] %v1871_v20  ;;  %2427 = vst [vmem:[#allocation21_spill] sm:$0xff] %v1873_v25 }
 0x367   :  { %v633_v24 = vpop.permute.xlu1 %632  ;;  %v1888_v25 = vpop.permute.xlu0 %284 }
 0x368   :  { %v648_v20 = vsel %vm642_vm1, %v1682_v54, %v633_v24  ;;  %2428 = vst [vmem:[#allocation22_spill] sm:$0xff] %v1888_v25  ;;  %v413_v54 = vsub.s32 2, %v1663_v46  ;;  %v1906_v25 = vmul.f32 %v503_v29, %v1578_v31  ;;  %v360_v29 = vsub.s32 1, %v1663_v46 }
 0x369   :  { %v671_v16 = vmul.f32 %v1692_v57, %v648_v20  ;;  %v543_v20 = vsel %vm536_vm4, %v533_v40, %v1800_v19  ;;  %v544_v19 = vsel %vm536_vm4, %v1807_v23, %v1785_v63  ;;  %v307_v40 = vsub.s32 0, %v1663_v46 }
 0x36a   :  { %v1950_v35 = vrot.slane %v1684_v55, %v413_v54  ;;  %v1956_v46 = vrot.slane %v1671_v50, %v360_v29  ;;  %v460_v23 = vsel %vm455_vm5, %v1830_v59, %v1834_v39 }
 0x36b   :  { %v675_v34 = vpack.c.bf16 %v671_v16, %v1702_v62  ;;  %v637_v36 = vpop.permute.xlu1 %636  ;;  %v1921_v57 = vpop.permute.xlu0 %343  ;;  %v418_v16 = vrot.slane %v1671_v50, %v413_v54  ;;  %v479_v62 = vrot.slane %v1717_v7, %v466_v48 }
 0x36c   :  { %v644_v26 = vsel %vm642_vm1, %v637_v36, %v1719_v8  ;;  %v646_v31 = vsel %vm642_vm1, %v633_v24, %v637_v36  ;;  %v560_v36 = vrot.slane %v1717_v7, %v1756_v33  ;;  %v471_v24 = vrot.slane %v1671_v50, %v466_v48 }
 0x36d   :  { %v672_v58 = vmul.f32 %v1676_v51, %v646_v31  ;;  %v673_v8 = vmul.f32 %v1731_v13, %v644_v26  ;;  %v475_v26 = vrot.slane %v1721_v9, %v466_v48  ;;  %v1970_v48 = vrot.slane %v1684_v55, %v360_v29 }
 0x36e   :  { %v564_v33 = vmul.f32 %v560_v36, %v543_v20  ;;  %v568_v63 = vmul.f32 %v560_v36, %v544_v19  ;;  %v2429_v20 = vpack.c.bf16 %v1789_v2, %v1793_v17  ;;  %v1986_v36 = vrot.slane %v1717_v7, %v360_v29 }
 0x36f   :  { %v677_v51 = vpack.c.bf16 %v673_v8, %v1745_v22  ;;  %v1944_v31 = vpop.permute.xlu1 %278  ;;  %v676_v13 = vpack.c.bf16 %v672_v58, %v1687_v56  ;;  %v1952_v0 = vpop.permute.xlu0 %292  ;;  %v1959_v22 = vrot.slane %v1721_v9, %v413_v54  ;;  %v1962_v56 = vrot.slane %v1717_v7, %v413_v54 }
 0x370   :  { %v462_v54 = vsel %vm455_vm5, %v1838_v1, %v1830_v59  ;;  %v1980_v58 = vrot.slane %v1671_v50, %v307_v40  ;;  %v1983_v8 = vrot.slane %v1721_v9, %v360_v29  ;;  %v2430_v2 = vpack.c.bf16 %v1723_v10, %v1725_v11 }
 0x371   :  { %747 = vmatprep.subr.bf16.mxu0 %v676_v13  ;;  %791 = vmatpush1.bf16.msra.mxu1 %v677_v51  ;;  %v461_v17 = vsel %vm455_vm5, %v1822_v42, %v1832_v60  ;;  %v407_v50 = vsel %vm402_vm6, %v1842_v4, %v1846_v12  ;;  %v2002_v59 = vrot.slane %v1684_v55, %v307_v40 }
 0x372   :  { %748 = vmatpush1.bf16.msra.mxu0 %v675_v34  ;;  %792 = vmatprep.subr.bf16.mxu1 %v2429_v20  ;;  %v572_v29 = vpack.c.bf16 %v568_v63, %v564_v33  ;;  %v481_v51 = vmul.f32 %v471_v24, %v460_v23  ;;  %v463_v10 = vsel %vm455_vm5, %v1836_v61, %v1822_v42 }
 0x373   :  { %v1988_v19 = vpop.permute.xlu1 %282  ;;  %749 = vmatprep.subr.bf16.mxu0 %v2430_v2  ;;  %v2004_v34 = vpop.permute.xlu0 %288  ;;  %v456_v11 = vsel %vm455_vm5, %v1850_v21, %v1838_v1  ;;  %v2015_v13 = vrot.slane %v1721_v9, %v307_v40  ;;  %v2431_v55 = vpack.c.bf16 %v1787_v14, %v1791_v15  ;;  %v2020_v20 = vmul.f32 %v467_v37, %v462_v54  ;;  %v2436_v54 = vld [vmem:[#allocation11_spill] sm:$0xff] }
 0x374   :  { %v408_v33 = vsel %vm402_vm6, %v1840_v45, %v1844_v6  ;;  %v458_v42 = vsel %vm455_vm5, %v1834_v39, %v1850_v21  ;;  %v2432_v9 = vpack.c.bf16 %v1751_v30, %v1753_v32  ;;  %v485_v14 = vmul.f32 %v471_v24, %v461_v17 }
 0x375   :  { %793 = vmatpush1.bf16.msra.mxu1 %v2431_v55  ;;  %v2034_v15 = vmul.f32 %v418_v16, %v407_v50  ;;  %v457_v1 = vsel %vm455_vm5, %v1848_v5, %v1836_v61  ;;  %v2041_v63 = vrot.slane %v1717_v7, %v307_v40  ;;  %v2433_v39 = vpack.c.bf16 %v1767_v52, %v1769_v53  ;;  %v2434_v40 = vld [vmem:[#allocation18_spill] sm:$0xff]  ;;  %v2438_v50 = vld [vmem:[#allocation12_spill] sm:$0xff] }
 0x376   :  { %750 = vmatpush1.bf16.msra.mxu0 %v2432_v9  ;;  %794 = vmatprep.subr.bf16.mxu1 %v572_v29  ;;  %v484_v21 = vmul.f32 %v467_v37, %v463_v10  ;;  %v459_v30 = vsel %vm455_vm5, %v1832_v60, %v1848_v5  ;;  %v483_v32 = vmul.f32 %v479_v62, %v456_v11  ;;  %v2435_v37 = vld [vmem:[#allocation10_spill] sm:$0xff]  ;;  %v2440_v29 = vld [vmem:[#allocation9_spill] sm:$0xff] }
 0x377   :  { %v342_v23 = vpop.permute.xlu1 %341  ;;  %751 = vmatprep.subr.bf16.mxu0 %v2433_v39  ;;  %v409_v61 = vsel %vm402_vm6, %v1854_v28, %v1842_v4  ;;  %v432_v24 = vmul.f32 %v418_v16, %v408_v33  ;;  %v482_v7 = vmul.f32 %v475_v26, %v458_v42  ;;  %v403_v52 = vsel %vm402_vm6, %v2434_v40, %v1854_v28  ;;  %v2058_v53 = vpop.permute.xlu0 %685  ;;  %v2439_v16 = vld [vmem:[#allocation8_spill] sm:$0xff]  ;;  %v2444_v33 = vld [vmem:[#allocation15_spill] sm:$0xff]  ;;  %v2445_v42 = vld [vmem:[#allocation13_spill] sm:$0xff] }
 0x378   :  { %v2437_v2 = vpack.c.bf16 %v2435_v37, %v2436_v54  ;;  %v489_v60 = vpack.c.bf16 %v485_v14, %v481_v51  ;;  %v488_v5 = vpack.c.bf16 %v484_v21, %v2020_v20  ;;  %v487_v17 = vmul.f32 %v479_v62, %v457_v1  ;;  %v2442_v51 = vld [vmem:[#allocation17_spill] sm:$0xff]  ;;  %v2448_v1 = vld [vmem:[#allocation20_spill] sm:$0xff] }
 0x379   :  { %v410_v4 = vsel %vm402_vm6, %v2438_v50, %v1840_v45  ;;  %v2441_v10 = vpack.c.bf16 %v2439_v16, %v2440_v29  ;;  %v486_v28 = vmul.f32 %v475_v26, %v459_v30  ;;  %v427_v11 = vmul.f32 %v1950_v35, %v409_v61  ;;  %v2452_v16 = vld [vmem:[#allocation22_spill] sm:$0xff]  ;;  %v2453_v29 = vld [vmem:[#allocation21_spill] sm:$0xff] }
 0x37a   :  { %795 = vmatpush1.bf16.msra.mxu1 %v2437_v2  ;;  %v404_v62 = vsel %vm402_vm6, %v2442_v51, %v2438_v50  ;;  %v2443_v45 = vpack.c.bf16 %v1883_v18, %v1901_v38  ;;  %v436_v20 = vpack.c.bf16 %v432_v24, %v2034_v15  ;;  %v355_v3 = vsel %vm349_vm7, %v2445_v42, %v2444_v33  ;;  %v2446_v18 = vld [vmem:[#allocation16_spill] sm:$0xff]  ;;  %v2447_v38 = vld [vmem:[#allocation14_spill] sm:$0xff] }
 0x37b   :  { %752 = vmatpush1.bf16.msra.mxu0 %v2441_v10  ;;  %796 = vmatprep.subr.bf16.mxu1 %v519_v44  ;;  %v291_v55 = vpop.permute.xlu1 %290  ;;  %v405_v43 = vsel %vm402_vm6, %v1846_v12, %v2434_v40  ;;  %v430_v44 = vmul.f32 %v1962_v56, %v403_v52  ;;  %v491_v26 = vpack.c.bf16 %v487_v17, %v483_v32  ;;  %v2122_v24 = vpop.permute.xlu0 %689 }
 0x37c   :  { %753 = vmatprep.subr.bf16.mxu0 %v2443_v45  ;;  %v490_v9 = vpack.c.bf16 %v486_v28, %v482_v7  ;;  %v431_v14 = vmul.f32 %v1950_v35, %v410_v4  ;;  %v354_v15 = vsel %vm349_vm7, %v2447_v38, %v2446_v18  ;;  %v350_v39 = vsel %vm349_vm7, %v342_v23, %v2448_v1 }
 0x37d   :  { %v2449_v21 = vpack.c.bf16 %v1891_v27, %v1906_v25  ;;  %v406_v12 = vsel %vm402_vm6, %v1844_v6, %v2442_v51  ;;  %v434_v35 = vmul.f32 %v1962_v56, %v404_v62  ;;  %v356_v30 = vsel %vm349_vm7, %v2448_v1, %v2447_v38  ;;  %v2451_v6 = vld [vmem:[#allocation19_spill] sm:$0xff]  ;;  %v1314_v38 = vld [vmem:[#allocation2 + $0x20] ss:$0 sm:$0xff] }
 0x37e   :  { %v2450_v32 = vpack.c.bf16 %v1894_v49, %v1909_v41  ;;  %v435_v25 = vpack.c.bf16 %v431_v14, %v427_v11  ;;  %v379_v27 = vmul.f32 %v1956_v46, %v355_v3  ;;  %v429_v61 = vmul.f32 %v1959_v22, %v405_v43 }
 0x37f   :  { %797 = vmatpush1.bf16.msra.mxu1 %v2449_v21  ;;  %v351_v56 = vsel %vm349_vm7, %v1921_v57, %v2451_v6  ;;  %v287_v7 = vpop.permute.xlu1 %286  ;;  %v357_v49 = vsel %vm349_vm7, %v2451_v6, %v2445_v42  ;;  %v352_v41 = vsel %vm349_vm7, %v2446_v18, %v342_v23  ;;  %v377_v40 = vmul.f32 %v1986_v36, %v350_v39  ;;  %v682_v45 = vpop.permute.xlu0 %681 }
 0x380   :  { %754 = vmatpush1.bf16.msra.mxu0 %v2450_v32  ;;  %798 = vmatprep.subr.bf16.mxu1 %v491_v26  ;;  %v438_v52 = vpack.c.bf16 %v434_v35, %v430_v44  ;;  %v375_v37 = vmul.f32 %v1956_v46, %v354_v15  ;;  %v433_v54 = vmul.f32 %v1959_v22, %v406_v12  ;;  %v1315_v26 = vld [vmem:[#allocation2 + $0x28] ss:$0 sm:$0xff] }
 0x381   :  { %755 = vmatprep.subr.bf16.mxu0 %v489_v60  ;;  %v374_v2 = vmul.f32 %v1970_v48, %v356_v30  ;;  %v297_v60 = vsel %vm296_vm8, %v287_v7, %v291_v55  ;;  %v353_v17 = vsel %vm349_vm7, %v2444_v33, %v1921_v57  ;;  %v381_v23 = vmul.f32 %v1986_v36, %v351_v56 }
 0x382   :  { %v301_v46 = vsel %vm296_vm8, %v1944_v31, %v1988_v19  ;;  %v437_v22 = vpack.c.bf16 %v433_v54, %v429_v61  ;;  %v378_v50 = vmul.f32 %v1970_v48, %v357_v49  ;;  %v298_v4 = vsel %vm296_vm8, %v2004_v34, %v1952_v0 }
 0x383   :  { %799 = vmatpush1.bf16.msra.mxu1 %v490_v9  ;;  %v376_v57 = vmul.f32 %v1983_v8, %v352_v41  ;;  %v684_v36 = vpop.permute.xlu1 %683  ;;  %v302_v10 = vsel %vm296_vm8, %v2453_v29, %v2452_v16  ;;  %v324_v48 = vmul.f32 %v2041_v63, %v297_v60  ;;  %v385_v28 = vpack.c.bf16 %v381_v23, %v377_v40  ;;  %v694_v21 = vpop.permute.xlu0 %693 }
 0x384   :  { %756 = vmatpush1.bf16.msra.mxu0 %v488_v5  ;;  %800 = vmatprep.subr.bf16.mxu1 %v438_v52  ;;  %v299_v5 = vsel %vm296_vm8, %v1988_v19, %v287_v7  ;;  %v380_v11 = vmul.f32 %v1983_v8, %v353_v17  ;;  %v322_v51 = vmul.f32 %v1980_v58, %v301_v46  ;;  %v2454_v60 = vmov 0  }
 0x385   :  { %757 = vmatprep.subr.bf16.mxu0 %v436_v20  ;;  %v303_v62 = vsel %vm296_vm8, %v291_v55, %v1944_v31  ;;  %v383_v20 = vpack.c.bf16 %v379_v27, %v375_v37  ;;  %v382_v33 = vpack.c.bf16 %v378_v50, %v374_v2  ;;  %v300_v19 = vsel %vm296_vm8, %v2452_v16, %v2004_v34  ;;  %v1317_v27 = vld [vmem:[#allocation2 + $0x38] ss:$0 sm:$0xff] }
 0x386   :  { %v328_v42 = vmul.f32 %v2041_v63, %v298_v4  ;;  %v326_v8 = vmul.f32 %v1980_v58, %v302_v10  ;;  %v304_v31 = vsel %vm296_vm8, %v1952_v0, %v2453_v29  ;;  %v384_v55 = vpack.c.bf16 %v380_v11, %v376_v57 }
 0x387   :  { %801 = vmatpush1.bf16.msra.mxu1 %v437_v22  ;;  %v323_v3 = vmul.f32 %v2015_v13, %v299_v5  ;;  %v688_v43 = vpop.permute.xlu1 %687  ;;  %v321_v44 = vmul.f32 %v2002_v59, %v303_v62  ;;  %v699_v34 = vsel %vm695_vm9, %v2058_v53, %v2122_v24  ;;  %v327_v9 = vmul.f32 %v2015_v13, %v300_v19 }
 0x388   :  { %758 = vmatpush1.bf16.msra.mxu0 %v435_v25  ;;  %802 = vmatprep.subr.bf16.mxu1 %v385_v28  ;;  %v698_v58 = vsel %vm695_vm9, %v684_v36, %v688_v43  ;;  %v332_v63 = vpack.c.bf16 %v328_v42, %v324_v48  ;;  %v330_v14 = vpack.c.bf16 %v326_v8, %v322_v51  ;;  %v1316_v25 = vld [vmem:[#allocation2 + $0x30] ss:$0 sm:$0xff] }
 0x389   :  { %759 = vmatprep.subr.bf16.mxu0 %v383_v20  ;;  %v721_v0 = vmul.f32 %v1315_v26, %v698_v58  ;;  %v325_v18 = vmul.f32 %v2002_v59, %v304_v31  ;;  %v701_v15 = vsel %vm695_vm9, %v682_v45, %v2058_v53  ;;  %v725_v1 = vmul.f32 %v1315_v26, %v699_v34 }
 0x38a   :  { %v331_v39 = vpack.c.bf16 %v327_v9, %v323_v3  ;;  %v724_v30 = vmul.f32 %v1314_v38, %v701_v15  ;;  %v697_v53 = vsel %vm695_vm9, %v2122_v24, %v694_v21  ;;  %v703_v61 = vsel %vm695_vm9, %v694_v21, %v682_v45  ;;  %v1355_v24 = vld [vmem:[%s2390_s5] ss:$8 sps:$4 sm:$0xff]  }
 0x38b   :  { %803 = vmatpush1.bf16.msra.mxu1 %v384_v55  ;;  %v680_v12 = vpop.permute.xlu1 %679  ;;  %v329_v35 = vpack.c.bf16 %v325_v18, %v321_v44  ;;  %v729_v59 = vpack.c.bf16 %v725_v1, %v721_v0  ;;  %v726_v41 = vmul.f32 %v1316_v25, %v697_v53  ;;  %v727_v40 = vmul.f32 %v1317_v27, %v703_v61  ;;  %v836_v61 = vld [vmem:[%s2392_s7 + $0x8] sm:$0xff] }
 0x38c   :  { %760 = vmatpush1.bf16.msra.mxu0 %v382_v33  ;;  %804 = vmatprep.subr.bf16.mxu1 %v332_v63  ;;  %v700_v13 = vsel %vm695_vm9, %v680_v12, %v684_v36 }
 0x38d   :  { %761 = vmatprep.subr.bf16.mxu0 %v330_v14  ;;  %v720_v32 = vmul.f32 %v1314_v38, %v700_v13 }
 0x38f   :  { %805 = vmatpush1.bf16.msra.mxu1 %v331_v39  ;;  %v728_v6 = vpack.c.bf16 %v724_v30, %v720_v32  ;;  %v692_v56 = vpop.permute.xlu1 %691  ;;  %v833_v32 = vld [vmem:[%s2391_s6] sm:$0xff] }
 0x390   :  { %762 = vmatpush1.bf16.msra.mxu0 %v329_v35  ;;  %v696_v7 = vsel %vm695_vm9, %v688_v43, %v692_v56  ;;  %v702_v49 = vsel %vm695_vm9, %v692_v56, %v680_v12  ;;  %v835_v56 = vld [vmem:[%s2392_s7] sm:$0xff] }
 0x391   :  { %777 = vmatprep.subr.bf16.mxu0 %v729_v59  ;;  %v722_v52 = vmul.f32 %v1316_v25, %v696_v7  ;;  %v723_v37 = vmul.f32 %v1317_v27, %v702_v49  ;;  %v834_v27 = vld [vmem:[%s2391_s6 + $0x8] sm:$0xff] }
 0x393   :  { %v730_v54 = vpack.c.bf16 %v726_v41, %v722_v52  ;;  %v731_v2 = vpack.c.bf16 %v727_v40, %v723_v37 }
 0x394   :  { %778 = vmatpush2.bf16.msra.mxu0 %v728_v6 }
 0x395   :  { %820 = vmatprep.subr.bf16.mxu1 %v731_v2 }
 0x396   :  { %821 = vmatpush2.bf16.msra.mxu1 %v730_v54 }
 0x397   :  { %780 = vmatmul.mubr.bf16.vlgmr.msra.gmra.mxu0 %v1355_v24 }
 0x398   :  { %983 = vmatprep.mubr.bf16.mxu0 %v2454_v60 }
 0x399   :  { %823 = vmatmul.mubr.bf16.vlgmr.msra.gmra.mxu1 %v1355_v24 }
 0x39a   :  { %1036 = vmatprep.mubr.bf16.mxu1 %v2454_v60 }
 0x457   :  { %v781_v47 = vpop.f32.mrf.mxu0 }
 0x459   :  { %v783_v17 = vpop.f32.mrf.mxu0  ;;  %v824_v22 = vpop.f32.mrf.mxu1 }
 0x45a   :  { %v837_v23 = vadd.f32 %v783_v17, %v781_v47 }
 0x45b   :  { %v785_v46 = vpop.f32.mrf.mxu0  ;;  %v826_v57 = vpop.f32.mrf.mxu1 }
 0x45c   :  { %v838_v50 = vadd.f32 %v837_v23, %v824_v22 }
 0x45d   :  { %v787_v4 = vpop.f32.mrf.mxu0  ;;  %v828_v29 = vpop.f32.mrf.mxu1 }
 0x45e   :  { %v842_v36 = vadd.f32 %v787_v4, %v785_v46  ;;  %v839_v16 = vadd.f32 %v838_v50, %v826_v57 }
 0x45f   :  { %v830_v5 = vpop.f32.mrf.mxu1 }
 0x460   :  { %v843_v10 = vadd.f32 %v842_v36, %v828_v29  ;;  %840 = vadd.xlane.f32.xlu1 %v839_v16 }
 0x462   :  { %v844_v48 = vadd.f32 %v843_v10, %v830_v5 }
 0x464   :  { %845 = vadd.xlane.f32.xlu0 %v844_v48 }
 0x4e9   :  { %v841_v28 = vpop.xlane.xlu1 %840 }
 0x4ea   :  { %v847_v11 = vmul.f32 0.001953125, %v841_v28 }
 0x4ec   :  { %v849_v51 = vsub.f32 %v781_v47, %v847_v11  ;;  %v850_v62 = vsub.f32 %v783_v17, %v847_v11  ;;  %v851_v45 = vsub.f32 %v824_v22, %v847_v11  ;;  %v852_v33 = vsub.f32 %v826_v57, %v847_v11 }
 0x4ed   :  { %v846_v20 = vpop.xlane.xlu0 %845 }
 0x4ee   :  { %v848_v19 = vmul.f32 0.001953125, %v846_v20  ;;  %v857_v42 = vmul.f32 %v849_v51, %v849_v51  ;;  %v858_v8 = vmul.f32 %v850_v62, %v850_v62  ;;  %v859_v31 = vmul.f32 %v851_v45, %v851_v45 }
 0x4ef   :  { %v860_v26 = vmul.f32 %v852_v33, %v852_v33 }
 0x4f0   :  { %v853_v55 = vsub.f32 %v785_v46, %v848_v19  ;;  %v854_v3 = vsub.f32 %v787_v4, %v848_v19  ;;  %v865_v43 = vadd.f32 %v858_v8, %v857_v42  ;;  %v855_v44 = vsub.f32 %v828_v29, %v848_v19 }
 0x4f1   :  { %v856_v58 = vsub.f32 %v830_v5, %v848_v19 }
 0x4f2   :  { %v866_v34 = vadd.f32 %v865_v43, %v859_v31  ;;  %v861_v63 = vmul.f32 %v853_v55, %v853_v55  ;;  %v862_v9 = vmul.f32 %v854_v3, %v854_v3  ;;  %v863_v14 = vmul.f32 %v855_v44, %v855_v44  ;;  %v1357_v31 = vld [vmem:[%s2393_s8 + $0x8] sm:$0xff]  }
 0x4f3   :  { %v864_v38 = vmul.f32 %v856_v58, %v856_v58 }
 0x4f4   :  { %v867_v0 = vadd.f32 %v866_v34, %v860_v26  ;;  %v870_v18 = vadd.f32 %v862_v9, %v861_v63 }
 0x4f6   :  { %868 = vadd.xlane.f32.xlu0 %v867_v0  ;;  %v871_v15 = vadd.f32 %v870_v18, %v863_v14 }
 0x4f8   :  { %v872_v1 = vadd.f32 %v871_v15, %v864_v38 }
 0x4fa   :  { %873 = vadd.xlane.f32.xlu1 %v872_v1 }
 0x57f   :  { %v869_v39 = vpop.xlane.xlu0 %868 }
 0x580   :  { %v875_v21 = vmul.f32 0.001953125, %v869_v39 }
 0x582   :  { %v877_v12 = vadd.f32 1e-05, %v875_v21 }
 0x583   :  { %v874_v35 = vpop.xlane.xlu1 %873 }
 0x584   :  { %1362 = vrsqrt.f32 %v877_v12  ;;  %v876_v13 = vmul.f32 0.001953125, %v874_v35 }
 0x586   :  { %v878_v30 = vadd.f32 1e-05, %v876_v13 }
 0x588   :  { %1364 = vrsqrt.f32 %v878_v30 }
 0x591   :  { %v1363_v59 = vpop.eup %1362 }
 0x592   :  { %v881_v25 = vmul.f32 %v1363_v59, %v833_v32 }
 0x594   :  { %885 = vperm.xlu0 %1351, %v881_v25  }
 0x595   :  { %v1365_v53 = vpop.eup %1364 }
 0x596   :  { %v882_v6 = vmul.f32 %v1365_v53, %v834_v27 }
 0x598   :  { %890 = vperm.xlu1 %1350, %v882_v6   ;;  %908 = vperm.xlu0 %1351, %v836_v61  }
 0x59c   :  { %903 = vperm.xlu1 %1350, %v835_v56  }
 0x60f   :  { %v886_v7 = vpop.permute.xlu0 %885 }
 0x610   :  { %v893_v54 = vmul.f32 %v886_v7, %v849_v51  ;;  %v894_v2 = vmul.f32 %v886_v7, %v850_v62  ;;  %v895_v23 = vmul.f32 %v886_v7, %v851_v45  ;;  %v896_v46 = vmul.f32 %v886_v7, %v852_v33  ;;  %v1356_v33 = vld [vmem:[%s2393_s8] sm:$0xff]  }
 0x613   :  { %v891_v49 = vpop.permute.xlu1 %890  ;;  %v909_v24 = vpop.permute.xlu0 %908 }
 0x614   :  { %v897_v41 = vmul.f32 %v891_v49, %v853_v55  ;;  %v898_v40 = vmul.f32 %v891_v49, %v854_v3  ;;  %v899_v52 = vmul.f32 %v891_v49, %v855_v44  ;;  %v900_v37 = vmul.f32 %v891_v49, %v856_v58 }
 0x616   :  { %v915_v47 = vadd.f32 %v909_v24, %v897_v41  ;;  %v916_v17 = vadd.f32 %v909_v24, %v898_v40  ;;  %v917_v22 = vadd.f32 %v909_v24, %v899_v52  ;;  %v918_v50 = vadd.f32 %v909_v24, %v900_v37 }
 0x617   :  { %v904_v4 = vpop.permute.xlu1 %903 }
 0x618   :  { %v911_v57 = vadd.f32 %v904_v4, %v893_v54  ;;  %v912_v36 = vadd.f32 %v904_v4, %v894_v2  ;;  %v913_v16 = vadd.f32 %v904_v4, %v895_v23  ;;  %v914_v29 = vadd.f32 %v904_v4, %v896_v46 }
 0x619   :  { %v923_v10 = vmax.f32 %v915_v47, 0.0  ;;  %v924_v28 = vmax.f32 %v916_v17, 0.0  ;;  %v925_v11 = vmax.f32 %v917_v22, 0.0  ;;  %v926_v51 = vmax.f32 %v918_v50, 0.0 }
 0x61a   :  { %v919_v5 = vmax.f32 %v911_v57, 0.0  ;;  %v920_v48 = vmax.f32 %v912_v36, 0.0  ;;  %v921_v20 = vmax.f32 %v913_v16, 0.0  ;;  %v922_v19 = vmax.f32 %v914_v29, 0.0 }
 0x61c   :  { %v932_v62 = vpack.c.bf16 %v924_v28, %v920_v48  ;;  %v931_v42 = vpack.c.bf16 %v923_v10, %v919_v5  ;;  %v934_v8 = vpack.c.bf16 %v926_v51, %v922_v19  ;;  %v933_v45 = vpack.c.bf16 %v925_v11, %v921_v20 }
 0x61e   :  { %965 = vmatprep.subr.bf16.mxu0 %v932_v62  ;;  %1018 = vmatprep.subr.bf16.mxu1 %v934_v8 }
 0x61f   :  { %966 = vmatpush1.bf16.msra.mxu0 %v931_v42  ;;  %1019 = vmatpush1.bf16.msra.mxu1 %v933_v45 }
 0x622   :  { %1324 = vmatmul.mubr.msk.bf16.vlgmr.msra.gmra.mxu0 %vm743_vm2, %v1356_v33  ;;  %1326 = vmatmul.mubr.msk.bf16.vlgmr.msra.gmra.mxu1 %vm743_vm2, %v1356_v33 }
 0x623   :  { %993 = vmatprep.mubr.bf16.mxu0 %v2454_v60  ;;  %1046 = vmatprep.mubr.bf16.mxu1 %v2454_v60 }
 0x62a   :  { %1325 = vmatmul.mubr.msk.bf16.gmra.mxu0 %vm743_vm2, %v1357_v31  ;;  %1327 = vmatmul.mubr.msk.bf16.gmra.mxu1 %vm743_vm2, %v1357_v31 }
 0x6e2   :  { %v985_v55 = vpop.f32.mrf.mxu0  ;;  %v1038_v3 = vpop.f32.mrf.mxu1 }
 0x6e4   :  { %v987_v43 = vpop.f32.mrf.mxu0  ;;  %v1040_v26 = vpop.f32.mrf.mxu1 }
 0x6e5   :  { %v1065_v44 = vadd.f32 %v987_v43, %v985_v55 }
 0x6e6   :  { %v989_v34 = vpop.f32.mrf.mxu0  ;;  %v1042_v63 = vpop.f32.mrf.mxu1 }
 0x6e7   :  { %v1066_v58 = vadd.f32 %v1065_v44, %v1038_v3 }
 0x6e8   :  { %v991_v9 = vpop.f32.mrf.mxu0  ;;  %v1044_v14 = vpop.f32.mrf.mxu1 }
 0x6e9   :  { %v1070_v0 = vadd.f32 %v991_v9, %v989_v34  ;;  %v1067_v60 = vadd.f32 %v1066_v58, %v1040_v26 }
 0x6ea   :  { %v995_v18 = vpop.f32.mrf.mxu0  ;;  %v1048_v15 = vpop.f32.mrf.mxu1 }
 0x6eb   :  { %v1071_v38 = vadd.f32 %v1070_v0, %v1042_v63  ;;  %1068 = vadd.xlane.f32.xlu1 %v1067_v60 }
 0x6ec   :  { %v997_v1 = vpop.f32.mrf.mxu0  ;;  %v1050_v21 = vpop.f32.mrf.mxu1 }
 0x6ed   :  { %v1075_v39 = vadd.f32 %v997_v1, %v995_v18  ;;  %v1072_v12 = vadd.f32 %v1071_v38, %v1044_v14 }
 0x6ee   :  { %v999_v35 = vpop.f32.mrf.mxu0  ;;  %v1052_v32 = vpop.f32.mrf.mxu1 }
 0x6ef   :  { %v1076_v13 = vadd.f32 %v1075_v39, %v1048_v15  ;;  %1073 = vadd.xlane.f32.xlu0 %v1072_v12  ;;  %v1061_v39 = vld [vmem:[%s2395_s10] sm:$0xff] }
 0x6f0   :  { %v1001_v30 = vpop.f32.mrf.mxu0  ;;  %v1054_v53 = vpop.f32.mrf.mxu1 }
 0x6f1   :  { %v1080_v59 = vadd.f32 %v1001_v30, %v999_v35  ;;  %v1077_v25 = vadd.f32 %v1076_v13, %v1050_v21 }
 0x6f3   :  { %v1081_v27 = vadd.f32 %v1080_v59, %v1052_v32  ;;  %1078 = vadd.xlane.f32.xlu0 %v1077_v25 }
 0x6f5   :  { %v1082_v61 = vadd.f32 %v1081_v27, %v1054_v53 }
 0x6f7   :  { %1083 = vadd.xlane.f32.xlu1 %v1082_v61 }
 0x774   :  { %v1069_v6 = vpop.xlane.xlu1 %1068 }
 0x775   :  { %v1085_v56 = vmul.f32 0.001953125, %v1069_v6 }
 0x777   :  { %v2229_v7 = vsub.f32 %v985_v55, %v1085_v56  ;;  %v2231_v49 = vsub.f32 %v987_v43, %v1085_v56  ;;  %v2233_v41 = vsub.f32 %v1038_v3, %v1085_v56  ;;  %v2235_v52 = vsub.f32 %v1040_v26, %v1085_v56 }
 0x778   :  { %v1074_v40 = vpop.xlane.xlu0 %1073 }
 0x779   :  { %v1086_v37 = vmul.f32 0.001953125, %v1074_v40  ;;  %v1105_v24 = vmul.f32 %v2229_v7, %v2229_v7  ;;  %v1106_v54 = vmul.f32 %v2231_v49, %v2231_v49  ;;  %v1107_v2 = vmul.f32 %v2233_v41, %v2233_v41  ;;  %v1057_v40 = vld [vmem:[%s2394_s9] sm:$0xff] }
 0x77a   :  { %v1108_v50 = vmul.f32 %v2235_v52, %v2235_v52 }
 0x77b   :  { %v2243_v47 = vsub.f32 %v989_v34, %v1086_v37  ;;  %v2245_v17 = vsub.f32 %v991_v9, %v1086_v37  ;;  %v1121_v23 = vadd.f32 %v1106_v54, %v1105_v24  ;;  %v2247_v46 = vsub.f32 %v1042_v63, %v1086_v37  ;;  %v1058_v54 = vld [vmem:[%s2394_s9 + $0x8] sm:$0xff] }
 0x77c   :  { %v1079_v22 = vpop.xlane.xlu0 %1078  ;;  %v2251_v4 = vsub.f32 %v1044_v14, %v1086_v37 }
 0x77d   :  { %v1087_v57 = vmul.f32 0.001953125, %v1079_v22  ;;  %v1122_v36 = vadd.f32 %v1121_v23, %v1107_v2  ;;  %v1109_v16 = vmul.f32 %v2243_v47, %v2243_v47  ;;  %v1110_v29 = vmul.f32 %v2245_v17, %v2245_v17  ;;  %v1059_v22 = vld [vmem:[%s2394_s9 + $0x10] sm:$0xff] }
 0x77e   :  { %v1111_v10 = vmul.f32 %v2247_v46, %v2247_v46  ;;  %v1112_v19 = vmul.f32 %v2251_v4, %v2251_v4 }
 0x77f   :  { %v2259_v5 = vsub.f32 %v995_v18, %v1087_v57  ;;  %v2261_v48 = vsub.f32 %v997_v1, %v1087_v57  ;;  %v1123_v28 = vadd.f32 %v1122_v36, %v1108_v50  ;;  %v1126_v11 = vadd.f32 %v1110_v29, %v1109_v16  ;;  %v1060_v36 = vld [vmem:[%s2394_s9 + $0x18] sm:$0xff]  ;;  %v1063_v29 = vld [vmem:[%s2395_s10 + $0x10] sm:$0xff]  ;;  %s1438_s9 = smov [#allocation5]  }
 0x780   :  { %v1084_v20 = vpop.xlane.xlu1 %1083  ;;  %v2265_v51 = vsub.f32 %v1048_v15, %v1087_v57  ;;  %v2267_v62 = vsub.f32 %v1050_v21, %v1087_v57  ;;  %v1062_v21 = vld [vmem:[%s2395_s10 + $0x8] sm:$0xff]  ;;  %s1291_s16 = sshll.u32 %s1438_s9, 4  ;;  %s1292_s16 = int_to_ptr.vmem [resolvable:$true] %s1291_s16 }
 0x781   :  { %v1088_v42 = vmul.f32 0.001953125, %v1084_v20  ;;  %1124 = vadd.xlane.f32.xlu0 %v1123_v28  ;;  %v1127_v8 = vadd.f32 %v1126_v11, %v1111_v10  ;;  %v1113_v45 = vmul.f32 %v2259_v5, %v2259_v5  ;;  %v1114_v33 = vmul.f32 %v2261_v48, %v2261_v48  ;;  %v1064_v28 = vld [vmem:[%s2395_s10 + $0x18] sm:$0xff]  ;;  %s1402_s19 = scalar_lea.vmem %s1292_s16, 2048  ;;  %p1407_p6 = scmp.lt.s32.totalorder %s1292_s16, %s1292_s16 }
 0x782   :  { %v1115_v31 = vmul.f32 %v2265_v51, %v2265_v51  ;;  %v1116_v26 = vmul.f32 %v2267_v62, %v2267_v62  ;;  %p1403_p5 = scmp.ne.s32.totalorder %s1292_s16, %s1402_s19  ;;  %p1408_p7 = scmp.lt.s32.totalorder %s1402_s19, %s1402_s19 }
 0x783   :  { %v2275_v55 = vsub.f32 %v999_v35, %v1088_v42  ;;  %v2277_v3 = vsub.f32 %v1001_v30, %v1088_v42  ;;  %v1128_v43 = vadd.f32 %v1127_v8, %v1112_v19  ;;  %v1131_v44 = vadd.f32 %v1114_v33, %v1113_v45 }
 0x784   :  { %v2281_v34 = vsub.f32 %v1052_v32, %v1088_v42  ;;  %v2283_v63 = vsub.f32 %v1054_v53, %v1088_v42  ;;  %p1409_p8 = por %p1408_p7, %p1407_p6 }
 0x785   :  { %1129 = vadd.xlane.f32.xlu1 %v1128_v43  ;;  %v1132_v58 = vadd.f32 %v1131_v44, %v1115_v31  ;;  %v1117_v9 = vmul.f32 %v2275_v55, %v2275_v55  ;;  %v1118_v0 = vmul.f32 %v2277_v3, %v2277_v3  ;;  %v1328_v31 = vld [vmem:[%s2385_s0 + $0x40] sm:$0xff]  ;;  %v1329_v43 = vld [vmem:[%s2385_s0 + $0x48] sm:$0xff] }
 0x786   :  { %v1119_v60 = vmul.f32 %v2281_v34, %v2281_v34  ;;  %v1120_v38 = vmul.f32 %v2283_v63, %v2283_v63  ;;  %p1410_p9 = pnand %p1409_p8, %p1403_p5 }
 0x787   :  { %v1133_v14 = vadd.f32 %v1132_v58, %v1116_v26  ;;  %v1136_v18 = vadd.f32 %v1118_v0, %v1117_v9 }
 0x789   :  { %1134 = vadd.xlane.f32.xlu0 %v1133_v14  ;;  %v1137_v15 = vadd.f32 %v1136_v18, %v1119_v60 }
 0x78b   :  { %v1138_v1 = vadd.f32 %v1137_v15, %v1120_v38 }
 0x78d   :  { %1139 = vadd.xlane.f32.xlu1 %v1138_v1 }
 0x79e   :  { %1195 = vperm.xlu1 %1350, %v1061_v39  }
 0x79f   :  { %1200 = vperm.xlu0 %1351, %v1062_v21  }
 0x80a   :  { %v1125_v12 = vpop.xlane.xlu0 %1124 }
 0x80b   :  { %v1141_v35 = vmul.f32 0.001953125, %v1125_v12 }
 0x80d   :  { %v1145_v13 = vadd.f32 1e-05, %v1141_v35 }
 0x80e   :  { %v1130_v30 = vpop.xlane.xlu1 %1129 }
 0x80f   :  { %1366 = vrsqrt.f32 %v1145_v13  ;;  %v1142_v32 = vmul.f32 0.001953125, %v1130_v30  ;;  %v1330_v13 = vld [vmem:[%s2385_s0 + $0x50] sm:$0xff]  ;;  %v1331_v30 = vld [vmem:[%s2385_s0 + $0x58] sm:$0xff] }
 0x811   :  { %v1146_v59 = vadd.f32 1e-05, %v1142_v32 }
 0x812   :  { %v1135_v25 = vpop.xlane.xlu0 %1134 }
 0x813   :  { %1368 = vrsqrt.f32 %v1146_v59  ;;  %v1143_v27 = vmul.f32 0.001953125, %v1135_v25 }
 0x815   :  { %v1147_v53 = vadd.f32 1e-05, %v1143_v27  ;;  %v1377_v27 = vld [vmem:[%s2385_s0 + $0x18] sm:$0xff] }
 0x816   :  { %v1140_v61 = vpop.xlane.xlu1 %1139 }
 0x817   :  { %1370 = vrsqrt.f32 %v1147_v53  ;;  %v1144_v6 = vmul.f32 0.001953125, %v1140_v61 }
 0x819   :  { %v1148_v56 = vadd.f32 1e-05, %v1144_v6 }
 0x81a   :  { %v1201_v11 = vpop.permute.xlu0 %1200  ;;  %v1196_v20 = vpop.permute.xlu1 %1195 }
 0x81b   :  { %1372 = vrsqrt.f32 %v1148_v56 }
 0x81c   :  { %v1367_v37 = vpop.eup %1366 }
 0x81d   :  { %v1153_v24 = vmul.f32 %v1367_v37, %v1057_v40 }
 0x81f   :  { %1159 = vperm.xlu0 %1351, %v1153_v24  }
 0x820   :  { %v1369_v2 = vpop.eup %1368 }
 0x821   :  { %v1154_v23 = vmul.f32 %v1369_v2, %v1058_v54 }
 0x823   :  { %1164 = vperm.xlu1 %1350, %v1154_v23  }
 0x824   :  { %v1371_v50 = vpop.eup %1370 }
 0x825   :  { %v1155_v57 = vmul.f32 %v1371_v50, %v1059_v22 }
 0x827   :  { %1169 = vperm.xlu1 %1350, %v1155_v57   ;;  %v1332_v57 = vld [vmem:[%s2385_s0 + $0x60] sm:$0xff] }
 0x828   :  { %v1373_v16 = vpop.eup %1372 }
 0x829   :  { %v1156_v10 = vmul.f32 %v1373_v16, %v1060_v36  ;;  %v1333_v36 = vld [vmem:[%s2385_s0 + $0x68] sm:$0xff] }
 0x82b   :  { %1205 = vperm.xlu1 %1350, %v1063_v29   ;;  %1174 = vperm.xlu0 %1351, %v1156_v10  }
 0x82f   :  { %1210 = vperm.xlu0 %1351, %v1064_v28   ;;  %v1379_v28 = vld [vmem:[%s2385_s0 + $0x28] sm:$0xff] }
 0x89a   :  { %v1160_v19 = vpop.permute.xlu0 %1159 }
 0x89b   :  { %v1177_v42 = vmul.f32 %v1160_v19, %v2229_v7  ;;  %v1178_v8 = vmul.f32 %v1160_v19, %v2231_v49  ;;  %v1179_v45 = vmul.f32 %v1160_v19, %v2233_v41  ;;  %v1180_v33 = vmul.f32 %v1160_v19, %v2235_v52  ;;  %v1374_v7 = vld [vmem:[%s2385_s0] sm:$0xff]  ;;  %v1375_v41 = vld [vmem:[%s2385_s0 + $0x8] sm:$0xff] }
 0x89d   :  { %v1213_v44 = vadd.f32 %v1196_v20, %v1177_v42  ;;  %v1214_v26 = vadd.f32 %v1196_v20, %v1178_v8  ;;  %v1215_v58 = vadd.f32 %v1196_v20, %v1179_v45  ;;  %v1216_v9 = vadd.f32 %v1196_v20, %v1180_v33 }
 0x89e   :  { %v1165_v0 = vpop.permute.xlu1 %1164 }
 0x89f   :  { %v1229_v49 = vadd.f32 %v1374_v7, %v1213_v44  ;;  %v1230_v52 = vadd.f32 %v1375_v41, %v1214_v26  ;;  %v1261_v14 = vadd.f32 %v1328_v31, %v1215_v58  ;;  %v1262_v60 = vadd.f32 %v1329_v43, %v1216_v9  ;;  %v1334_v9 = vld [vmem:[%s2385_s0 + $0x70] sm:$0xff]  ;;  %v1381_v41 = vld [vmem:[%s2385_s0 + $0x38] sm:$0xff] }
 0x8a0   :  { %v1181_v18 = vmul.f32 %v1165_v0, %v2243_v47  ;;  %v1182_v38 = vmul.f32 %v1165_v0, %v2245_v17  ;;  %v1183_v15 = vmul.f32 %v1165_v0, %v2247_v46  ;;  %v1184_v1 = vmul.f32 %v1165_v0, %v2251_v4  ;;  %v1376_v46 = vld [vmem:[%s2385_s0 + $0x10] sm:$0xff]  ;;  %v1335_v0 = vld [vmem:[%s2385_s0 + $0x78] sm:$0xff] }
 0x8a1   :  { %v1237_v39 = vmax.f32 %v1229_v49, 0.0  ;;  %v1238_v21 = vmax.f32 %v1230_v52, 0.0  ;;  %v1269_v12 = vmax.f32 %v1261_v14, 0.0  ;;  %v1270_v35 = vmax.f32 %v1262_v60, 0.0 }
 0x8a2   :  { %v1217_v32 = vadd.f32 %v1201_v11, %v1181_v18  ;;  %v1218_v47 = vadd.f32 %v1201_v11, %v1182_v38  ;;  %v1219_v59 = vadd.f32 %v1201_v11, %v1183_v15  ;;  %v1220_v17 = vadd.f32 %v1201_v11, %v1184_v1  ;;  %v1170_v25 = vpop.permute.xlu1 %1169 }
 0x8a3   :  { %1245 = vst [vmem:[#allocation5] sm:$0xff] %v1237_v39  ;;  %1246 = vst [vmem:[#allocation5 + $0x8] sm:$0xff] %v1238_v21  ;;  %v1185_v56 = vmul.f32 %v1170_v25, %v2259_v5  ;;  %v1186_v40 = vmul.f32 %v1170_v25, %v2261_v48  ;;  %v1187_v37 = vmul.f32 %v1170_v25, %v2265_v51 }
 0x8a4   :  { %1278 = vst [vmem:[#allocation5 + $0x40] sm:$0xff] %v1269_v12  ;;  %1279 = vst [vmem:[#allocation5 + $0x48] sm:$0xff] %v1270_v35  ;;  %v1231_v4 = vadd.f32 %v1376_v46, %v1217_v32  ;;  %v1232_v53 = vadd.f32 %v1377_v27, %v1218_v47  ;;  %v1263_v61 = vadd.f32 %v1330_v13, %v1219_v59 }
 0x8a5   :  { %v1264_v6 = vadd.f32 %v1331_v30, %v1220_v17  ;;  %v1188_v24 = vmul.f32 %v1170_v25, %v2267_v62  ;;  %v1378_v62 = vld [vmem:[%s2385_s0 + $0x20] sm:$0xff] }
 0x8a6   :  { %v1239_v54 = vmax.f32 %v1231_v4, 0.0  ;;  %v1240_v2 = vmax.f32 %v1232_v53, 0.0  ;;  %v1271_v23 = vmax.f32 %v1263_v61, 0.0  ;;  %v1175_v50 = vpop.permute.xlu0 %1174  ;;  %v1206_v5 = vpop.permute.xlu1 %1205 }
 0x8a7   :  { %v1272_v22 = vmax.f32 %v1264_v6, 0.0  ;;  %v1221_v16 = vadd.f32 %v1206_v5, %v1185_v56  ;;  %v1222_v48 = vadd.f32 %v1206_v5, %v1186_v40  ;;  %v1223_v29 = vadd.f32 %v1206_v5, %v1187_v37 }
 0x8a8   :  { %v1224_v51 = vadd.f32 %v1206_v5, %v1188_v24  ;;  %1247 = vst [vmem:[#allocation5 + $0x10] sm:$0xff] %v1239_v54  ;;  %1248 = vst [vmem:[#allocation5 + $0x18] sm:$0xff] %v1240_v2  ;;  %v1189_v42 = vmul.f32 %v1175_v50, %v2275_v55  ;;  %v1190_v8 = vmul.f32 %v1175_v50, %v2277_v3 }
 0x8a9   :  { %1280 = vst [vmem:[#allocation5 + $0x50] sm:$0xff] %v1271_v23  ;;  %1281 = vst [vmem:[#allocation5 + $0x58] sm:$0xff] %v1272_v22  ;;  %v1233_v10 = vadd.f32 %v1378_v62, %v1221_v16  ;;  %v1234_v11 = vadd.f32 %v1379_v28, %v1222_v48  ;;  %v1265_v20 = vadd.f32 %v1332_v57, %v1223_v29 }
 0x8aa   :  { %v1266_v19 = vadd.f32 %v1333_v36, %v1224_v51  ;;  %v1191_v45 = vmul.f32 %v1175_v50, %v2281_v34  ;;  %v1192_v33 = vmul.f32 %v1175_v50, %v2283_v63  ;;  %v1211_v31 = vpop.permute.xlu0 %1210  ;;  %v1380_v34 = vld [vmem:[%s2385_s0 + $0x30] sm:$0xff] }
 0x8ab   :  { %v1241_v43 = vmax.f32 %v1233_v10, 0.0  ;;  %v1242_v44 = vmax.f32 %v1234_v11, 0.0  ;;  %v1273_v26 = vmax.f32 %v1265_v20, 0.0  ;;  %v1225_v55 = vadd.f32 %v1211_v31, %v1189_v42 }
 0x8ac   :  { %v1274_v58 = vmax.f32 %v1266_v19, 0.0  ;;  %v1226_v7 = vadd.f32 %v1211_v31, %v1190_v8  ;;  %v1227_v3 = vadd.f32 %v1211_v31, %v1191_v45  ;;  %v1228_v49 = vadd.f32 %v1211_v31, %v1192_v33 }
 0x8ad   :  { %1249 = vst [vmem:[#allocation5 + $0x20] sm:$0xff] %v1241_v43  ;;  %1250 = vst [vmem:[#allocation5 + $0x28] sm:$0xff] %v1242_v44  ;;  %v1235_v63 = vadd.f32 %v1380_v34, %v1225_v55 }
 0x8ae   :  { %1282 = vst [vmem:[#allocation5 + $0x60] sm:$0xff] %v1273_v26  ;;  %1283 = vst [vmem:[#allocation5 + $0x68] sm:$0xff] %v1274_v58  ;;  %v1236_v52 = vadd.f32 %v1381_v41, %v1226_v7  ;;  %v1267_v14 = vadd.f32 %v1334_v9, %v1227_v3  ;;  %v1268_v60 = vadd.f32 %v1335_v0, %v1228_v49 }
 0x8af   :  { %v1243_v18 = vmax.f32 %v1235_v63, 0.0 }
 0x8b0   :  { %v1244_v38 = vmax.f32 %v1236_v52, 0.0  ;;  %v1275_v15 = vmax.f32 %v1267_v14, 0.0  ;;  %v1276_v1 = vmax.f32 %v1268_v60, 0.0 }
 0x8b1   :  { %1251 = vst [vmem:[#allocation5 + $0x30] sm:$0xff] %v1243_v18 }
 0x8b2   :  { %1252 = vst [vmem:[#allocation5 + $0x38] sm:$0xff] %v1244_v38  ;;  %1284 = vst [vmem:[#allocation5 + $0x70] sm:$0xff] %v1275_v15 }
 0x8b3   :  { %1285 = vst [vmem:[#allocation5 + $0x78] sm:$0xff] %v1276_v1 }
 0x8b4   :  { %1413 = shalt.err (!%p1410_p9)
}
 0x8b5   :  { %s1439_s0 = smov 256  }
 0x8b6   :  { %1297 = dma.vmem_to_hbm [thread:$0]  %s1292_s16, 2048, %s2396_s11, [#allocation4], %s1439_s0, %s1439_s0, %s1435_s1  }
 0x8b7   :  { %1424 = dma.done.wait [#allocation4], 2048  }
 0x8b8   :  { %1425 = vsyncadd [#allocation4], 4294965248 }
 0x8b9   :  { %1301 = vsyncpa [#allocation3], 1 }
 0x8ba   :  { %1302 = vsyncpa [#allocation4], 1 }

</bundles_post_ra>
